<compile_context>
chip_gen: v7x
topology: tpu7x:2x2x1
jax: 0.10.0
libtpu: 0.0.40
codegen_flags: <defaults>
</compile_context>

<pallas_src>
import jax
import jax.numpy as jnp
from jax.experimental import pallas as pl
from jax.experimental.pallas import tpu as pltpu

D_MODEL = 32
N_HEADS = 4
D_FF = 64
N_LAYERS = 2
EPS = 1e-6


def _layer_norm(x, alpha, beta, eps=EPS):
    """Exact reproduction of the reference LayerNorm on an (M, D) tile.

    Keeps the reference's bug: subtracts the SUM (not the mean) and uses the
    Bessel-corrected std about the true mean (torch.Tensor.std default).
    """
    d = x.shape[-1]
    x_sum = jnp.sum(x, axis=-1, keepdims=True)                       # "x_mean" (really a sum)
    mu = x_sum / d
    var = jnp.sum((x - mu) ** 2, axis=-1, keepdims=True) / (d - 1)   # unbiased variance
    std = jnp.sqrt(var)
    return alpha * (x - x_sum) / (std + eps) + beta


def encoder_kernel(x_ref, mask_ref,
                   wqkv_ref, bqkv_ref, wo_ref, w1_ref, b1_ref, w2_ref, vec_ref,
                   fin_ref, o_ref):
    B, S, _ = mask_ref.shape
    M, D = x_ref.shape                       # M = B * S
    n_layers = wqkv_ref.shape[0]
    dk = D // N_HEADS
    scale = jnp.float32(1.0 / float(dk) ** 0.5)
    NEG = jnp.float32(-1e9)

    x = x_ref[...].astype(jnp.float32)       # (M, D), resident in VMEM for the whole forward
    masked = mask_ref[...] == 0.0            # (B, S, S), hoisted: computed once per kernel

    for l in range(n_layers):                # static unroll over layers
        vec = vec_ref[l]                     # (8, D) packed small params
        ln1_a, ln1_b = vec[0:1, :], vec[1:2, :]
        ln2_a, ln2_b = vec[2:3, :], vec[3:4, :]
        b_o, b_ff2 = vec[4:5, :], vec[5:6, :]
        wo = wo_ref[l]                       # (D, D)

        # --- sublayer 1: x + SelfAttn(LayerNorm(x))   (dropout p=0 / eval)
        xn = _layer_norm(x, ln1_a, ln1_b)
        qkv = jnp.dot(xn, wqkv_ref[l],
                      preferred_element_type=jnp.float32) + bqkv_ref[l]   # (M, 3D)
        qkv3 = qkv.reshape(B, S, 3 * D)      # sublane-aligned split of M into (B, S)

        attn = jnp.zeros((M, D), jnp.float32)
        for h in range(N_HEADS):             # static unroll over heads
            lo = h * dk
            qh = qkv3[:, :, lo:lo + dk] * scale              # (B, S, dk), scale folded into Q
            kh = qkv3[:, :, D + lo:D + lo + dk]              # (B, S, dk)
            vh = qkv3[:, :, 2 * D + lo:2 * D + lo + dk]      # (B, S, dk)
            # scores: contract on dk directly (no materialized K transpose)
            s = jnp.einsum('bqd,bkd->bqk', qh, kh,
                           preferred_element_type=jnp.float32)            # (B, S, S)
            s = jnp.where(masked, NEG, s)                    # masked_fill(-1e9) semantics
            s = s - jnp.max(s, axis=-1, keepdims=True)
            p = jnp.exp(s)
            p = p / jnp.sum(p, axis=-1, keepdims=True)
            oh = jnp.einsum('bqk,bkd->bqd', p, vh,
                            preferred_element_type=jnp.float32)           # (B, S, dk)
            # Fold this head back through W_o's matching row block; accumulating here
            # replaces a lane-axis concatenate + single big W_o matmul.
            attn = attn + jnp.dot(oh.reshape(M, dk), wo[lo:lo + dk, :],
                                  preferred_element_type=jnp.float32)
        y = x + attn + b_o

        # --- sublayer 2: y + FFN(LayerNorm(y))
        yn = _layer_norm(y, ln2_a, ln2_b)
        h1 = jnp.maximum(jnp.dot(yn, w1_ref[l],
                                 preferred_element_type=jnp.float32) + b1_ref[l], 0.0)
        ff = jnp.dot(h1, w2_ref[l], preferred_element_type=jnp.float32) + b_ff2
        x = y + ff

    # --- final (reference) LayerNorm
    fin = fin_ref[...]
    o_ref[...] = _layer_norm(x, fin[0:1, :], fin[1:2, :]).astype(o_ref.dtype)


def encoder_forward(x, mask, layer_params, final_ln):
    B, S, D = x.shape
    n_in = 2 + len(layer_params) + 1
    vmem = pl.BlockSpec(memory_space=pltpu.MemorySpace.VMEM)   # whole array -> VMEM, one DMA
    out2 = pl.pallas_call(
        encoder_kernel,
        out_shape=jax.ShapeDtypeStruct((B * S, D), x.dtype),
        in_specs=[vmem] * n_in,
        out_specs=vmem,
    )(x.reshape(B * S, D), mask, *layer_params, final_ln)
    return out2.reshape(B, S, D)


encoder_forward_jit = jax.jit(encoder_forward)


# ---------------------------------------------------------------------------
# Pure-JAX reference (same assumed EncoderLayer) for a correctness check.
# ---------------------------------------------------------------------------
def _ref_layer_norm(x, alpha, beta, eps=EPS):
    d = x.shape[-1]
    x_sum = jnp.sum(x, axis=-1, keepdims=True)
    mu = x_sum / d
    var = jnp.sum((x - mu) ** 2, axis=-1, keepdims=True) / (d - 1)
    return alpha * (x - x_sum) / (jnp.sqrt(var) + eps) + beta


def encoder_reference(x, mask, layer_params, final_ln):
    wqkv, bqkv, wo, w1, b1, w2, vec = layer_params
    B, S, D = x.shape
    dk = D // N_HEADS
    h = x.reshape(B * S, D)
    masked = mask == 0.0
    for l in range(N_LAYERS):
        v = vec[l]
        xn = _ref_layer_norm(h, v[0:1], v[1:2])
        qkv = (xn @ wqkv[l] + bqkv[l]).reshape(B, S, 3 * D)
        attn = jnp.zeros((B * S, D), jnp.float32)
        for hd in range(N_HEADS):
            lo = hd * dk
            qh = qkv[:, :, lo:lo + dk]
            kh = qkv[:, :, D + lo:D + lo + dk]
            vh = qkv[:, :, 2 * D + lo:2 * D + lo + dk]
            s = jnp.einsum('bqd,bkd->bqk', qh, kh) / jnp.sqrt(jnp.float32(dk))
            s = jnp.where(masked, -1e9, s)
            p = jax.nn.softmax(s, axis=-1)
            oh = jnp.einsum('bqk,bkd->bqd', p, vh)
            attn = attn + oh.reshape(B * S, dk) @ wo[l][lo:lo + dk, :]
        y = h + attn + v[4:5]
        yn = _ref_layer_norm(y, v[2:3], v[3:4])
        h = y + jnp.maximum(yn @ w1[l] + b1[l], 0.0) @ w2[l] + v[5:6]
    out = _ref_layer_norm(h, final_ln[0:1], final_ln[1:2])
    return out.reshape(B, S, D)


def init_params(key):
    def dense(k, fan_in, fan_out):
        return (jax.random.normal(k, (fan_in, fan_out), jnp.float32)
                / jnp.sqrt(jnp.float32(fan_in)))

    wqkv, bqkv, wo, w1, b1, w2, vec = [], [], [], [], [], [], []
    for _ in range(N_LAYERS):
        key, k_q, k_k, k_v, k_o, k_1, k_2 = jax.random.split(key, 7)
        wqkv.append(jnp.concatenate(
            [dense(k_q, D_MODEL, D_MODEL),
             dense(k_k, D_MODEL, D_MODEL),
             dense(k_v, D_MODEL, D_MODEL)], axis=1))              # (D, 3D) fused QKV
        bqkv.append(jnp.zeros((1, 3 * D_MODEL), jnp.float32))     # fused QKV bias
        wo.append(dense(k_o, D_MODEL, D_MODEL))
        w1.append(dense(k_1, D_MODEL, D_FF))
        b1.append(jnp.zeros((1, D_FF), jnp.float32))
        w2.append(dense(k_2, D_FF, D_MODEL))
        vec.append(jnp.stack([
            jnp.ones((D_MODEL,), jnp.float32),    # ln1 alpha
            jnp.zeros((D_MODEL,), jnp.float32),   # ln1 beta
            jnp.ones((D_MODEL,), jnp.float32),    # ln2 alpha
            jnp.zeros((D_MODEL,), jnp.float32),   # ln2 beta
            jnp.zeros((D_MODEL,), jnp.float32),   # b_o
            jnp.zeros((D_MODEL,), jnp.float32),   # b_ff2
            jnp.zeros((D_MODEL,), jnp.float32),   # pad
            jnp.zeros((D_MODEL,), jnp.float32),   # pad
        ]))                                       # (8, D)
    # Stack each packed param over the layer axis -> 7 arrays total.
    layer_params = tuple(jnp.stack(a) for a in (wqkv, bqkv, wo, w1, b1, w2, vec))
    final_ln = jnp.stack([jnp.ones((D_MODEL,), jnp.float32),
                          jnp.zeros((D_MODEL,), jnp.float32)])    # (2, D): [alpha, beta]
    return layer_params, final_ln


if __name__ == "__main__":
    B, S = 2, 8
    key = jax.random.PRNGKey(0)
    kx, kp = jax.random.split(key)
    x = jax.random.normal(kx, (B, S, D_MODEL), jnp.float32)
    mask = jnp.ones((B, S, S), jnp.float32)          # attend to everything

    layer_params, final_ln = init_params(kp)
    out = encoder_forward_jit(x, mask, layer_params, final_ln)
    out = jax.block_until_ready(out)
    assert out.shape == (B, S, D_MODEL)
    assert bool(jnp.all(jnp.isfinite(out)))

    ref = encoder_reference(x, mask, layer_params, final_ln)
    assert bool(jnp.allclose(out, ref, atol=2e-3, rtol=2e-3)), "mismatch vs reference"
    print("KERNEL_OK")
</pallas_src>

<mosaic_0001>
module attributes {stable_mosaic.version = 11 : i64} {
  func.func @encoder_kernel(%arg0: memref<16x32xf32, #tpu.memory_space<vmem>>, %arg1: memref<2x8x8xf32, #tpu.memory_space<vmem>>, %arg2: memref<2x32x96xf32, #tpu.memory_space<vmem>>, %arg3: memref<2x1x96xf32, #tpu.memory_space<vmem>>, %arg4: memref<2x32x32xf32, #tpu.memory_space<vmem>>, %arg5: memref<2x32x64xf32, #tpu.memory_space<vmem>>, %arg6: memref<2x1x64xf32, #tpu.memory_space<vmem>>, %arg7: memref<2x64x32xf32, #tpu.memory_space<vmem>>, %arg8: memref<2x8x32xf32, #tpu.memory_space<vmem>>, %arg9: memref<2x32xf32, #tpu.memory_space<vmem>>, %arg10: memref<16x32xf32, #tpu.memory_space<vmem>>) attributes {dimension_semantics = [], scalar_prefetch = 0 : i64, scratch_operands = 0 : i64, tpu.core_type = #tpu.core_type<tc>} {
    %c0 = arith.constant 0 : index
    %c0_0 = arith.constant 0 : index
    %0 = vector.load %arg0[%c0, %c0_0] : memref<16x32xf32, #tpu.memory_space<vmem>>, vector<16x32xf32>
    %c0_1 = arith.constant 0 : index
    %c0_2 = arith.constant 0 : index
    %c0_3 = arith.constant 0 : index
    %1 = vector.load %arg1[%c0_1, %c0_2, %c0_3] : memref<2x8x8xf32, #tpu.memory_space<vmem>>, vector<2x8x8xf32>
    %cst = arith.constant 0.000000e+00 : f32
    %2 = vector.broadcast %cst : f32 to vector<2x8x8xf32>
    %3 = arith.cmpf oeq, %1, %2 : vector<2x8x8xf32>
    %c0_4 = arith.constant 0 : index
    %c0_5 = arith.constant 0 : index
    %c0_6 = arith.constant 0 : index
    %4 = vector.load %arg8[%c0_4, %c0_5, %c0_6] : memref<2x8x32xf32, #tpu.memory_space<vmem>>, vector<1x8x32xf32>
    %5 = vector.shape_cast %4 : vector<1x8x32xf32> to vector<8x32xf32>
    %6 = vector.extract_strided_slice %5 {offsets = [0, 0], sizes = [1, 32], strides = [1, 1]} : vector<8x32xf32> to vector<1x32xf32>
    %7 = vector.extract_strided_slice %5 {offsets = [1, 0], sizes = [1, 32], strides = [1, 1]} : vector<8x32xf32> to vector<1x32xf32>
    %8 = vector.extract_strided_slice %5 {offsets = [2, 0], sizes = [1, 32], strides = [1, 1]} : vector<8x32xf32> to vector<1x32xf32>
    %9 = vector.extract_strided_slice %5 {offsets = [3, 0], sizes = [1, 32], strides = [1, 1]} : vector<8x32xf32> to vector<1x32xf32>
    %10 = vector.extract_strided_slice %5 {offsets = [4, 0], sizes = [1, 32], strides = [1, 1]} : vector<8x32xf32> to vector<1x32xf32>
    %11 = vector.extract_strided_slice %5 {offsets = [5, 0], sizes = [1, 32], strides = [1, 1]} : vector<8x32xf32> to vector<1x32xf32>
    %c0_7 = arith.constant 0 : index
    %c0_8 = arith.constant 0 : index
    %c0_9 = arith.constant 0 : index
    %12 = vector.load %arg4[%c0_7, %c0_8, %c0_9] : memref<2x32x32xf32, #tpu.memory_space<vmem>>, vector<1x32x32xf32>
    %13 = vector.shape_cast %12 : vector<1x32x32xf32> to vector<32x32xf32>
    %cst_10 = arith.constant dense<0.000000e+00> : vector<16xf32>
    %14 = vector.multi_reduction <add>, %0, %cst_10 [1] : vector<16x32xf32> to vector<16xf32>
    %15 = vector.shape_cast %14 : vector<16xf32> to vector<16x1xf32>
    %cst_11 = arith.constant 3.200000e+01 : f32
    %16 = vector.broadcast %cst_11 : f32 to vector<16x1xf32>
    %17 = arith.divf %15, %16 : vector<16x1xf32>
    %18 = vector.broadcast %17 : vector<16x1xf32> to vector<16x32xf32>
    %19 = arith.subf %0, %18 : vector<16x32xf32>
    %20 = arith.mulf %19, %19 : vector<16x32xf32>
    %cst_12 = arith.constant dense<0.000000e+00> : vector<16xf32>
    %21 = vector.multi_reduction <add>, %20, %cst_12 [1] : vector<16x32xf32> to vector<16xf32>
    %22 = vector.shape_cast %21 : vector<16xf32> to vector<16x1xf32>
    %cst_13 = arith.constant 3.100000e+01 : f32
    %23 = vector.broadcast %cst_13 : f32 to vector<16x1xf32>
    %24 = arith.divf %22, %23 : vector<16x1xf32>
    %25 = math.sqrt %24 : vector<16x1xf32>
    %26 = vector.broadcast %15 : vector<16x1xf32> to vector<16x32xf32>
    %27 = arith.subf %0, %26 : vector<16x32xf32>
    %28 = vector.broadcast %6 : vector<1x32xf32> to vector<16x32xf32>
    %29 = arith.mulf %28, %27 : vector<16x32xf32>
    %cst_14 = arith.constant 9.99999997E-7 : f32
    %30 = vector.broadcast %cst_14 : f32 to vector<16x1xf32>
    %31 = arith.addf %25, %30 : vector<16x1xf32>
    %32 = vector.broadcast %31 : vector<16x1xf32> to vector<16x32xf32>
    %33 = arith.divf %29, %32 : vector<16x32xf32>
    %34 = vector.broadcast %7 : vector<1x32xf32> to vector<16x32xf32>
    %35 = arith.addf %33, %34 : vector<16x32xf32>
    %c0_15 = arith.constant 0 : index
    %c0_16 = arith.constant 0 : index
    %c0_17 = arith.constant 0 : index
    %36 = vector.load %arg2[%c0_15, %c0_16, %c0_17] : memref<2x32x96xf32, #tpu.memory_space<vmem>>, vector<1x32x96xf32>
    %37 = vector.shape_cast %36 : vector<1x32x96xf32> to vector<32x96xf32>
    %cst_18 = arith.constant dense<0.000000e+00> : vector<16x96xf32>
    %38 = tpu.matmul %35, %37, %cst_18 {dimension_numbers = #tpu.dot_dimension_numbers<[1], [0], [0], [1], [0, 0, 1, 1], [], []>} : vector<16x32xf32>, vector<32x96xf32>, vector<16x96xf32> -> vector<16x96xf32>
    %c0_19 = arith.constant 0 : index
    %c0_20 = arith.constant 0 : index
    %c0_21 = arith.constant 0 : index
    %39 = vector.load %arg3[%c0_19, %c0_20, %c0_21] : memref<2x1x96xf32, #tpu.memory_space<vmem>>, vector<1x1x96xf32>
    %40 = vector.shape_cast %39 : vector<1x1x96xf32> to vector<1x96xf32>
    %41 = vector.broadcast %40 : vector<1x96xf32> to vector<16x96xf32>
    %42 = arith.addf %38, %41 : vector<16x96xf32>
    %43 = vector.shape_cast %42 : vector<16x96xf32> to vector<2x8x96xf32>
    %cst_22 = arith.constant 0.000000e+00 : f32
    %44 = vector.broadcast %cst_22 : f32 to vector<16x32xf32>
    %45 = vector.extract_strided_slice %43 {offsets = [0, 0, 0], sizes = [2, 8, 8], strides = [1, 1, 1]} : vector<2x8x96xf32> to vector<2x8x8xf32>
    %cst_23 = arith.constant 0.353553385 : f32
    %46 = vector.broadcast %cst_23 : f32 to vector<2x8x8xf32>
    %47 = arith.mulf %45, %46 : vector<2x8x8xf32>
    %48 = vector.extract_strided_slice %43 {offsets = [0, 0, 32], sizes = [2, 8, 8], strides = [1, 1, 1]} : vector<2x8x96xf32> to vector<2x8x8xf32>
    %49 = vector.extract_strided_slice %43 {offsets = [0, 0, 64], sizes = [2, 8, 8], strides = [1, 1, 1]} : vector<2x8x96xf32> to vector<2x8x8xf32>
    "tpu.trace_start"() <{level = 10 : i32, message = "bqd,bkd->bqk"}> : () -> ()
    %cst_24 = arith.constant dense<0.000000e+00> : vector<2x8x8xf32>
    %50 = tpu.matmul %47, %48, %cst_24 {dimension_numbers = #tpu.dot_dimension_numbers<[2], [2], [1], [1], [0, 0, 0, 1, 1, 1], [0], [0]>} : vector<2x8x8xf32>, vector<2x8x8xf32>, vector<2x8x8xf32> -> vector<2x8x8xf32>
    %cst_25 = arith.constant -1.000000e+09 : f32
    "tpu.trace_stop"() : () -> ()
    %51 = vector.broadcast %cst_25 : f32 to vector<2x8x8xf32>
    %52 = arith.select %3, %51, %50 : vector<2x8x8xi1>, vector<2x8x8xf32>
    %cst_26 = arith.constant dense<0xFF800000> : vector<2x8xf32>
    %53 = vector.multi_reduction <maximumf>, %52, %cst_26 [2] : vector<2x8x8xf32> to vector<2x8xf32>
    %54 = vector.shape_cast %53 : vector<2x8xf32> to vector<2x8x1xf32>
    %55 = vector.broadcast %54 : vector<2x8x1xf32> to vector<2x8x8xf32>
    %56 = arith.subf %52, %55 : vector<2x8x8xf32>
    %57 = math.exp %56 : vector<2x8x8xf32>
    %cst_27 = arith.constant dense<0.000000e+00> : vector<2x8xf32>
    %58 = vector.multi_reduction <add>, %57, %cst_27 [2] : vector<2x8x8xf32> to vector<2x8xf32>
    %59 = vector.shape_cast %58 : vector<2x8xf32> to vector<2x8x1xf32>
    %60 = vector.broadcast %59 : vector<2x8x1xf32> to vector<2x8x8xf32>
    %61 = arith.divf %57, %60 : vector<2x8x8xf32>
    "tpu.trace_start"() <{level = 10 : i32, message = "bqk,bkd->bqd"}> : () -> ()
    %cst_28 = arith.constant dense<0.000000e+00> : vector<2x8x8xf32>
    %62 = tpu.matmul %61, %49, %cst_28 {dimension_numbers = #tpu.dot_dimension_numbers<[2], [1], [1], [2], [0, 0, 0, 1, 1, 2], [0], [0]>} : vector<2x8x8xf32>, vector<2x8x8xf32>, vector<2x8x8xf32> -> vector<2x8x8xf32>
    "tpu.trace_stop"() : () -> ()
    %63 = vector.shape_cast %62 : vector<2x8x8xf32> to vector<16x8xf32>
    %64 = vector.extract_strided_slice %13 {offsets = [0, 0], sizes = [8, 32], strides = [1, 1]} : vector<32x32xf32> to vector<8x32xf32>
    %cst_29 = arith.constant dense<0.000000e+00> : vector<16x32xf32>
    %65 = tpu.matmul %63, %64, %cst_29 {dimension_numbers = #tpu.dot_dimension_numbers<[1], [0], [0], [1], [0, 0, 1, 1], [], []>} : vector<16x8xf32>, vector<8x32xf32>, vector<16x32xf32> -> vector<16x32xf32>
    %66 = arith.addf %44, %65 : vector<16x32xf32>
    %67 = vector.extract_strided_slice %43 {offsets = [0, 0, 8], sizes = [2, 8, 8], strides = [1, 1, 1]} : vector<2x8x96xf32> to vector<2x8x8xf32>
    %cst_30 = arith.constant 0.353553385 : f32
    %68 = vector.broadcast %cst_30 : f32 to vector<2x8x8xf32>
    %69 = arith.mulf %67, %68 : vector<2x8x8xf32>
    %70 = vector.extract_strided_slice %43 {offsets = [0, 0, 40], sizes = [2, 8, 8], strides = [1, 1, 1]} : vector<2x8x96xf32> to vector<2x8x8xf32>
    %71 = vector.extract_strided_slice %43 {offsets = [0, 0, 72], sizes = [2, 8, 8], strides = [1, 1, 1]} : vector<2x8x96xf32> to vector<2x8x8xf32>
    "tpu.trace_start"() <{level = 10 : i32, message = "bqd,bkd->bqk"}> : () -> ()
    %cst_31 = arith.constant dense<0.000000e+00> : vector<2x8x8xf32>
    %72 = tpu.matmul %69, %70, %cst_31 {dimension_numbers = #tpu.dot_dimension_numbers<[2], [2], [1], [1], [0, 0, 0, 1, 1, 1], [0], [0]>} : vector<2x8x8xf32>, vector<2x8x8xf32>, vector<2x8x8xf32> -> vector<2x8x8xf32>
    %cst_32 = arith.constant -1.000000e+09 : f32
    "tpu.trace_stop"() : () -> ()
    %73 = vector.broadcast %cst_32 : f32 to vector<2x8x8xf32>
    %74 = arith.select %3, %73, %72 : vector<2x8x8xi1>, vector<2x8x8xf32>
    %cst_33 = arith.constant dense<0xFF800000> : vector<2x8xf32>
    %75 = vector.multi_reduction <maximumf>, %74, %cst_33 [2] : vector<2x8x8xf32> to vector<2x8xf32>
    %76 = vector.shape_cast %75 : vector<2x8xf32> to vector<2x8x1xf32>
    %77 = vector.broadcast %76 : vector<2x8x1xf32> to vector<2x8x8xf32>
    %78 = arith.subf %74, %77 : vector<2x8x8xf32>
    %79 = math.exp %78 : vector<2x8x8xf32>
    %cst_34 = arith.constant dense<0.000000e+00> : vector<2x8xf32>
    %80 = vector.multi_reduction <add>, %79, %cst_34 [2] : vector<2x8x8xf32> to vector<2x8xf32>
    %81 = vector.shape_cast %80 : vector<2x8xf32> to vector<2x8x1xf32>
    %82 = vector.broadcast %81 : vector<2x8x1xf32> to vector<2x8x8xf32>
    %83 = arith.divf %79, %82 : vector<2x8x8xf32>
    "tpu.trace_start"() <{level = 10 : i32, message = "bqk,bkd->bqd"}> : () -> ()
    %cst_35 = arith.constant dense<0.000000e+00> : vector<2x8x8xf32>
    %84 = tpu.matmul %83, %71, %cst_35 {dimension_numbers = #tpu.dot_dimension_numbers<[2], [1], [1], [2], [0, 0, 0, 1, 1, 2], [0], [0]>} : vector<2x8x8xf32>, vector<2x8x8xf32>, vector<2x8x8xf32> -> vector<2x8x8xf32>
    "tpu.trace_stop"() : () -> ()
    %85 = vector.shape_cast %84 : vector<2x8x8xf32> to vector<16x8xf32>
    %86 = vector.extract_strided_slice %13 {offsets = [8, 0], sizes = [8, 32], strides = [1, 1]} : vector<32x32xf32> to vector<8x32xf32>
    %cst_36 = arith.constant dense<0.000000e+00> : vector<16x32xf32>
    %87 = tpu.matmul %85, %86, %cst_36 {dimension_numbers = #tpu.dot_dimension_numbers<[1], [0], [0], [1], [0, 0, 1, 1], [], []>} : vector<16x8xf32>, vector<8x32xf32>, vector<16x32xf32> -> vector<16x32xf32>
    %88 = arith.addf %66, %87 : vector<16x32xf32>
    %89 = vector.extract_strided_slice %43 {offsets = [0, 0, 16], sizes = [2, 8, 8], strides = [1, 1, 1]} : vector<2x8x96xf32> to vector<2x8x8xf32>
    %cst_37 = arith.constant 0.353553385 : f32
    %90 = vector.broadcast %cst_37 : f32 to vector<2x8x8xf32>
    %91 = arith.mulf %89, %90 : vector<2x8x8xf32>
    %92 = vector.extract_strided_slice %43 {offsets = [0, 0, 48], sizes = [2, 8, 8], strides = [1, 1, 1]} : vector<2x8x96xf32> to vector<2x8x8xf32>
    %93 = vector.extract_strided_slice %43 {offsets = [0, 0, 80], sizes = [2, 8, 8], strides = [1, 1, 1]} : vector<2x8x96xf32> to vector<2x8x8xf32>
    "tpu.trace_start"() <{level = 10 : i32, message = "bqd,bkd->bqk"}> : () -> ()
    %cst_38 = arith.constant dense<0.000000e+00> : vector<2x8x8xf32>
    %94 = tpu.matmul %91, %92, %cst_38 {dimension_numbers = #tpu.dot_dimension_numbers<[2], [2], [1], [1], [0, 0, 0, 1, 1, 1], [0], [0]>} : vector<2x8x8xf32>, vector<2x8x8xf32>, vector<2x8x8xf32> -> vector<2x8x8xf32>
    %cst_39 = arith.constant -1.000000e+09 : f32
    "tpu.trace_stop"() : () -> ()
    %95 = vector.broadcast %cst_39 : f32 to vector<2x8x8xf32>
    %96 = arith.select %3, %95, %94 : vector<2x8x8xi1>, vector<2x8x8xf32>
    %cst_40 = arith.constant dense<0xFF800000> : vector<2x8xf32>
    %97 = vector.multi_reduction <maximumf>, %96, %cst_40 [2] : vector<2x8x8xf32> to vector<2x8xf32>
    %98 = vector.shape_cast %97 : vector<2x8xf32> to vector<2x8x1xf32>
    %99 = vector.broadcast %98 : vector<2x8x1xf32> to vector<2x8x8xf32>
    %100 = arith.subf %96, %99 : vector<2x8x8xf32>
    %101 = math.exp %100 : vector<2x8x8xf32>
    %cst_41 = arith.constant dense<0.000000e+00> : vector<2x8xf32>
    %102 = vector.multi_reduction <add>, %101, %cst_41 [2] : vector<2x8x8xf32> to vector<2x8xf32>
    %103 = vector.shape_cast %102 : vector<2x8xf32> to vector<2x8x1xf32>
    %104 = vector.broadcast %103 : vector<2x8x1xf32> to vector<2x8x8xf32>
    %105 = arith.divf %101, %104 : vector<2x8x8xf32>
    "tpu.trace_start"() <{level = 10 : i32, message = "bqk,bkd->bqd"}> : () -> ()
    %cst_42 = arith.constant dense<0.000000e+00> : vector<2x8x8xf32>
    %106 = tpu.matmul %105, %93, %cst_42 {dimension_numbers = #tpu.dot_dimension_numbers<[2], [1], [1], [2], [0, 0, 0, 1, 1, 2], [0], [0]>} : vector<2x8x8xf32>, vector<2x8x8xf32>, vector<2x8x8xf32> -> vector<2x8x8xf32>
    "tpu.trace_stop"() : () -> ()
    %107 = vector.shape_cast %106 : vector<2x8x8xf32> to vector<16x8xf32>
    %108 = vector.extract_strided_slice %13 {offsets = [16, 0], sizes = [8, 32], strides = [1, 1]} : vector<32x32xf32> to vector<8x32xf32>
    %cst_43 = arith.constant dense<0.000000e+00> : vector<16x32xf32>
    %109 = tpu.matmul %107, %108, %cst_43 {dimension_numbers = #tpu.dot_dimension_numbers<[1], [0], [0], [1], [0, 0, 1, 1], [], []>} : vector<16x8xf32>, vector<8x32xf32>, vector<16x32xf32> -> vector<16x32xf32>
    %110 = arith.addf %88, %109 : vector<16x32xf32>
    %111 = vector.extract_strided_slice %43 {offsets = [0, 0, 24], sizes = [2, 8, 8], strides = [1, 1, 1]} : vector<2x8x96xf32> to vector<2x8x8xf32>
    %cst_44 = arith.constant 0.353553385 : f32
    %112 = vector.broadcast %cst_44 : f32 to vector<2x8x8xf32>
    %113 = arith.mulf %111, %112 : vector<2x8x8xf32>
    %114 = vector.extract_strided_slice %43 {offsets = [0, 0, 56], sizes = [2, 8, 8], strides = [1, 1, 1]} : vector<2x8x96xf32> to vector<2x8x8xf32>
    %115 = vector.extract_strided_slice %43 {offsets = [0, 0, 88], sizes = [2, 8, 8], strides = [1, 1, 1]} : vector<2x8x96xf32> to vector<2x8x8xf32>
    "tpu.trace_start"() <{level = 10 : i32, message = "bqd,bkd->bqk"}> : () -> ()
    %cst_45 = arith.constant dense<0.000000e+00> : vector<2x8x8xf32>
    %116 = tpu.matmul %113, %114, %cst_45 {dimension_numbers = #tpu.dot_dimension_numbers<[2], [2], [1], [1], [0, 0, 0, 1, 1, 1], [0], [0]>} : vector<2x8x8xf32>, vector<2x8x8xf32>, vector<2x8x8xf32> -> vector<2x8x8xf32>
    %cst_46 = arith.constant -1.000000e+09 : f32
    "tpu.trace_stop"() : () -> ()
    %117 = vector.broadcast %cst_46 : f32 to vector<2x8x8xf32>
    %118 = arith.select %3, %117, %116 : vector<2x8x8xi1>, vector<2x8x8xf32>
    %cst_47 = arith.constant dense<0xFF800000> : vector<2x8xf32>
    %119 = vector.multi_reduction <maximumf>, %118, %cst_47 [2] : vector<2x8x8xf32> to vector<2x8xf32>
    %120 = vector.shape_cast %119 : vector<2x8xf32> to vector<2x8x1xf32>
    %121 = vector.broadcast %120 : vector<2x8x1xf32> to vector<2x8x8xf32>
    %122 = arith.subf %118, %121 : vector<2x8x8xf32>
    %123 = math.exp %122 : vector<2x8x8xf32>
    %cst_48 = arith.constant dense<0.000000e+00> : vector<2x8xf32>
    %124 = vector.multi_reduction <add>, %123, %cst_48 [2] : vector<2x8x8xf32> to vector<2x8xf32>
    %125 = vector.shape_cast %124 : vector<2x8xf32> to vector<2x8x1xf32>
    %126 = vector.broadcast %125 : vector<2x8x1xf32> to vector<2x8x8xf32>
    %127 = arith.divf %123, %126 : vector<2x8x8xf32>
    "tpu.trace_start"() <{level = 10 : i32, message = "bqk,bkd->bqd"}> : () -> ()
    %cst_49 = arith.constant dense<0.000000e+00> : vector<2x8x8xf32>
    %128 = tpu.matmul %127, %115, %cst_49 {dimension_numbers = #tpu.dot_dimension_numbers<[2], [1], [1], [2], [0, 0, 0, 1, 1, 2], [0], [0]>} : vector<2x8x8xf32>, vector<2x8x8xf32>, vector<2x8x8xf32> -> vector<2x8x8xf32>
    "tpu.trace_stop"() : () -> ()
    %129 = vector.shape_cast %128 : vector<2x8x8xf32> to vector<16x8xf32>
    %130 = vector.extract_strided_slice %13 {offsets = [24, 0], sizes = [8, 32], strides = [1, 1]} : vector<32x32xf32> to vector<8x32xf32>
    %cst_50 = arith.constant dense<0.000000e+00> : vector<16x32xf32>
    %131 = tpu.matmul %129, %130, %cst_50 {dimension_numbers = #tpu.dot_dimension_numbers<[1], [0], [0], [1], [0, 0, 1, 1], [], []>} : vector<16x8xf32>, vector<8x32xf32>, vector<16x32xf32> -> vector<16x32xf32>
    %132 = arith.addf %110, %131 : vector<16x32xf32>
    %133 = arith.addf %0, %132 : vector<16x32xf32>
    %134 = vector.broadcast %10 : vector<1x32xf32> to vector<16x32xf32>
    %135 = arith.addf %133, %134 : vector<16x32xf32>
    %cst_51 = arith.constant dense<0.000000e+00> : vector<16xf32>
    %136 = vector.multi_reduction <add>, %135, %cst_51 [1] : vector<16x32xf32> to vector<16xf32>
    %137 = vector.shape_cast %136 : vector<16xf32> to vector<16x1xf32>
    %cst_52 = arith.constant 3.200000e+01 : f32
    %138 = vector.broadcast %cst_52 : f32 to vector<16x1xf32>
    %139 = arith.divf %137, %138 : vector<16x1xf32>
    %140 = vector.broadcast %139 : vector<16x1xf32> to vector<16x32xf32>
    %141 = arith.subf %135, %140 : vector<16x32xf32>
    %142 = arith.mulf %141, %141 : vector<16x32xf32>
    %cst_53 = arith.constant dense<0.000000e+00> : vector<16xf32>
    %143 = vector.multi_reduction <add>, %142, %cst_53 [1] : vector<16x32xf32> to vector<16xf32>
    %144 = vector.shape_cast %143 : vector<16xf32> to vector<16x1xf32>
    %cst_54 = arith.constant 3.100000e+01 : f32
    %145 = vector.broadcast %cst_54 : f32 to vector<16x1xf32>
    %146 = arith.divf %144, %145 : vector<16x1xf32>
    %147 = math.sqrt %146 : vector<16x1xf32>
    %148 = vector.broadcast %137 : vector<16x1xf32> to vector<16x32xf32>
    %149 = arith.subf %135, %148 : vector<16x32xf32>
    %150 = vector.broadcast %8 : vector<1x32xf32> to vector<16x32xf32>
    %151 = arith.mulf %150, %149 : vector<16x32xf32>
    %cst_55 = arith.constant 9.99999997E-7 : f32
    %152 = vector.broadcast %cst_55 : f32 to vector<16x1xf32>
    %153 = arith.addf %147, %152 : vector<16x1xf32>
    %154 = vector.broadcast %153 : vector<16x1xf32> to vector<16x32xf32>
    %155 = arith.divf %151, %154 : vector<16x32xf32>
    %156 = vector.broadcast %9 : vector<1x32xf32> to vector<16x32xf32>
    %157 = arith.addf %155, %156 : vector<16x32xf32>
    %c0_56 = arith.constant 0 : index
    %c0_57 = arith.constant 0 : index
    %c0_58 = arith.constant 0 : index
    %158 = vector.load %arg5[%c0_56, %c0_57, %c0_58] : memref<2x32x64xf32, #tpu.memory_space<vmem>>, vector<1x32x64xf32>
    %159 = vector.shape_cast %158 : vector<1x32x64xf32> to vector<32x64xf32>
    %cst_59 = arith.constant dense<0.000000e+00> : vector<16x64xf32>
    %160 = tpu.matmul %157, %159, %cst_59 {dimension_numbers = #tpu.dot_dimension_numbers<[1], [0], [0], [1], [0, 0, 1, 1], [], []>} : vector<16x32xf32>, vector<32x64xf32>, vector<16x64xf32> -> vector<16x64xf32>
    %c0_60 = arith.constant 0 : index
    %c0_61 = arith.constant 0 : index
    %c0_62 = arith.constant 0 : index
    %161 = vector.load %arg6[%c0_60, %c0_61, %c0_62] : memref<2x1x64xf32, #tpu.memory_space<vmem>>, vector<1x1x64xf32>
    %162 = vector.shape_cast %161 : vector<1x1x64xf32> to vector<1x64xf32>
    %163 = vector.broadcast %162 : vector<1x64xf32> to vector<16x64xf32>
    %164 = arith.addf %160, %163 : vector<16x64xf32>
    %cst_63 = arith.constant 0.000000e+00 : f32
    %165 = vector.broadcast %cst_63 : f32 to vector<16x64xf32>
    %166 = arith.maximumf %164, %165 : vector<16x64xf32>
    %c0_64 = arith.constant 0 : index
    %c0_65 = arith.constant 0 : index
    %c0_66 = arith.constant 0 : index
    %167 = vector.load %arg7[%c0_64, %c0_65, %c0_66] : memref<2x64x32xf32, #tpu.memory_space<vmem>>, vector<1x64x32xf32>
    %168 = vector.shape_cast %167 : vector<1x64x32xf32> to vector<64x32xf32>
    %cst_67 = arith.constant dense<0.000000e+00> : vector<16x32xf32>
    %169 = tpu.matmul %166, %168, %cst_67 {dimension_numbers = #tpu.dot_dimension_numbers<[1], [0], [0], [1], [0, 0, 1, 1], [], []>} : vector<16x64xf32>, vector<64x32xf32>, vector<16x32xf32> -> vector<16x32xf32>
    %170 = vector.broadcast %11 : vector<1x32xf32> to vector<16x32xf32>
    %171 = arith.addf %169, %170 : vector<16x32xf32>
    %172 = arith.addf %135, %171 : vector<16x32xf32>
    %c1 = arith.constant 1 : index
    %c0_68 = arith.constant 0 : index
    %c0_69 = arith.constant 0 : index
    %173 = vector.load %arg8[%c1, %c0_68, %c0_69] : memref<2x8x32xf32, #tpu.memory_space<vmem>>, vector<1x8x32xf32>
    %174 = vector.shape_cast %173 : vector<1x8x32xf32> to vector<8x32xf32>
    %175 = vector.extract_strided_slice %174 {offsets = [0, 0], sizes = [1, 32], strides = [1, 1]} : vector<8x32xf32> to vector<1x32xf32>
    %176 = vector.extract_strided_slice %174 {offsets = [1, 0], sizes = [1, 32], strides = [1, 1]} : vector<8x32xf32> to vector<1x32xf32>
    %177 = vector.extract_strided_slice %174 {offsets = [2, 0], sizes = [1, 32], strides = [1, 1]} : vector<8x32xf32> to vector<1x32xf32>
    %178 = vector.extract_strided_slice %174 {offsets = [3, 0], sizes = [1, 32], strides = [1, 1]} : vector<8x32xf32> to vector<1x32xf32>
    %179 = vector.extract_strided_slice %174 {offsets = [4, 0], sizes = [1, 32], strides = [1, 1]} : vector<8x32xf32> to vector<1x32xf32>
    %180 = vector.extract_strided_slice %174 {offsets = [5, 0], sizes = [1, 32], strides = [1, 1]} : vector<8x32xf32> to vector<1x32xf32>
    %c1_70 = arith.constant 1 : index
    %c0_71 = arith.constant 0 : index
    %c0_72 = arith.constant 0 : index
    %181 = vector.load %arg4[%c1_70, %c0_71, %c0_72] : memref<2x32x32xf32, #tpu.memory_space<vmem>>, vector<1x32x32xf32>
    %182 = vector.shape_cast %181 : vector<1x32x32xf32> to vector<32x32xf32>
    %cst_73 = arith.constant dense<0.000000e+00> : vector<16xf32>
    %183 = vector.multi_reduction <add>, %172, %cst_73 [1] : vector<16x32xf32> to vector<16xf32>
    %184 = vector.shape_cast %183 : vector<16xf32> to vector<16x1xf32>
    %cst_74 = arith.constant 3.200000e+01 : f32
    %185 = vector.broadcast %cst_74 : f32 to vector<16x1xf32>
    %186 = arith.divf %184, %185 : vector<16x1xf32>
    %187 = vector.broadcast %186 : vector<16x1xf32> to vector<16x32xf32>
    %188 = arith.subf %172, %187 : vector<16x32xf32>
    %189 = arith.mulf %188, %188 : vector<16x32xf32>
    %cst_75 = arith.constant dense<0.000000e+00> : vector<16xf32>
    %190 = vector.multi_reduction <add>, %189, %cst_75 [1] : vector<16x32xf32> to vector<16xf32>
    %191 = vector.shape_cast %190 : vector<16xf32> to vector<16x1xf32>
    %cst_76 = arith.constant 3.100000e+01 : f32
    %192 = vector.broadcast %cst_76 : f32 to vector<16x1xf32>
    %193 = arith.divf %191, %192 : vector<16x1xf32>
    %194 = math.sqrt %193 : vector<16x1xf32>
    %195 = vector.broadcast %184 : vector<16x1xf32> to vector<16x32xf32>
    %196 = arith.subf %172, %195 : vector<16x32xf32>
    %197 = vector.broadcast %175 : vector<1x32xf32> to vector<16x32xf32>
    %198 = arith.mulf %197, %196 : vector<16x32xf32>
    %cst_77 = arith.constant 9.99999997E-7 : f32
    %199 = vector.broadcast %cst_77 : f32 to vector<16x1xf32>
    %200 = arith.addf %194, %199 : vector<16x1xf32>
    %201 = vector.broadcast %200 : vector<16x1xf32> to vector<16x32xf32>
    %202 = arith.divf %198, %201 : vector<16x32xf32>
    %203 = vector.broadcast %176 : vector<1x32xf32> to vector<16x32xf32>
    %204 = arith.addf %202, %203 : vector<16x32xf32>
    %c1_78 = arith.constant 1 : index
    %c0_79 = arith.constant 0 : index
    %c0_80 = arith.constant 0 : index
    %205 = vector.load %arg2[%c1_78, %c0_79, %c0_80] : memref<2x32x96xf32, #tpu.memory_space<vmem>>, vector<1x32x96xf32>
    %206 = vector.shape_cast %205 : vector<1x32x96xf32> to vector<32x96xf32>
    %cst_81 = arith.constant dense<0.000000e+00> : vector<16x96xf32>
    %207 = tpu.matmul %204, %206, %cst_81 {dimension_numbers = #tpu.dot_dimension_numbers<[1], [0], [0], [1], [0, 0, 1, 1], [], []>} : vector<16x32xf32>, vector<32x96xf32>, vector<16x96xf32> -> vector<16x96xf32>
    %c1_82 = arith.constant 1 : index
    %c0_83 = arith.constant 0 : index
    %c0_84 = arith.constant 0 : index
    %208 = vector.load %arg3[%c1_82, %c0_83, %c0_84] : memref<2x1x96xf32, #tpu.memory_space<vmem>>, vector<1x1x96xf32>
    %209 = vector.shape_cast %208 : vector<1x1x96xf32> to vector<1x96xf32>
    %210 = vector.broadcast %209 : vector<1x96xf32> to vector<16x96xf32>
    %211 = arith.addf %207, %210 : vector<16x96xf32>
    %212 = vector.shape_cast %211 : vector<16x96xf32> to vector<2x8x96xf32>
    %cst_85 = arith.constant 0.000000e+00 : f32
    %213 = vector.broadcast %cst_85 : f32 to vector<16x32xf32>
    %214 = vector.extract_strided_slice %212 {offsets = [0, 0, 0], sizes = [2, 8, 8], strides = [1, 1, 1]} : vector<2x8x96xf32> to vector<2x8x8xf32>
    %cst_86 = arith.constant 0.353553385 : f32
    %215 = vector.broadcast %cst_86 : f32 to vector<2x8x8xf32>
    %216 = arith.mulf %214, %215 : vector<2x8x8xf32>
    %217 = vector.extract_strided_slice %212 {offsets = [0, 0, 32], sizes = [2, 8, 8], strides = [1, 1, 1]} : vector<2x8x96xf32> to vector<2x8x8xf32>
    %218 = vector.extract_strided_slice %212 {offsets = [0, 0, 64], sizes = [2, 8, 8], strides = [1, 1, 1]} : vector<2x8x96xf32> to vector<2x8x8xf32>
    "tpu.trace_start"() <{level = 10 : i32, message = "bqd,bkd->bqk"}> : () -> ()
    %cst_87 = arith.constant dense<0.000000e+00> : vector<2x8x8xf32>
    %219 = tpu.matmul %216, %217, %cst_87 {dimension_numbers = #tpu.dot_dimension_numbers<[2], [2], [1], [1], [0, 0, 0, 1, 1, 1], [0], [0]>} : vector<2x8x8xf32>, vector<2x8x8xf32>, vector<2x8x8xf32> -> vector<2x8x8xf32>
    %cst_88 = arith.constant -1.000000e+09 : f32
    "tpu.trace_stop"() : () -> ()
    %220 = vector.broadcast %cst_88 : f32 to vector<2x8x8xf32>
    %221 = arith.select %3, %220, %219 : vector<2x8x8xi1>, vector<2x8x8xf32>
    %cst_89 = arith.constant dense<0xFF800000> : vector<2x8xf32>
    %222 = vector.multi_reduction <maximumf>, %221, %cst_89 [2] : vector<2x8x8xf32> to vector<2x8xf32>
    %223 = vector.shape_cast %222 : vector<2x8xf32> to vector<2x8x1xf32>
    %224 = vector.broadcast %223 : vector<2x8x1xf32> to vector<2x8x8xf32>
    %225 = arith.subf %221, %224 : vector<2x8x8xf32>
    %226 = math.exp %225 : vector<2x8x8xf32>
    %cst_90 = arith.constant dense<0.000000e+00> : vector<2x8xf32>
    %227 = vector.multi_reduction <add>, %226, %cst_90 [2] : vector<2x8x8xf32> to vector<2x8xf32>
    %228 = vector.shape_cast %227 : vector<2x8xf32> to vector<2x8x1xf32>
    %229 = vector.broadcast %228 : vector<2x8x1xf32> to vector<2x8x8xf32>
    %230 = arith.divf %226, %229 : vector<2x8x8xf32>
    "tpu.trace_start"() <{level = 10 : i32, message = "bqk,bkd->bqd"}> : () -> ()
    %cst_91 = arith.constant dense<0.000000e+00> : vector<2x8x8xf32>
    %231 = tpu.matmul %230, %218, %cst_91 {dimension_numbers = #tpu.dot_dimension_numbers<[2], [1], [1], [2], [0, 0, 0, 1, 1, 2], [0], [0]>} : vector<2x8x8xf32>, vector<2x8x8xf32>, vector<2x8x8xf32> -> vector<2x8x8xf32>
    "tpu.trace_stop"() : () -> ()
    %232 = vector.shape_cast %231 : vector<2x8x8xf32> to vector<16x8xf32>
    %233 = vector.extract_strided_slice %182 {offsets = [0, 0], sizes = [8, 32], strides = [1, 1]} : vector<32x32xf32> to vector<8x32xf32>
    %cst_92 = arith.constant dense<0.000000e+00> : vector<16x32xf32>
    %234 = tpu.matmul %232, %233, %cst_92 {dimension_numbers = #tpu.dot_dimension_numbers<[1], [0], [0], [1], [0, 0, 1, 1], [], []>} : vector<16x8xf32>, vector<8x32xf32>, vector<16x32xf32> -> vector<16x32xf32>
    %235 = arith.addf %213, %234 : vector<16x32xf32>
    %236 = vector.extract_strided_slice %212 {offsets = [0, 0, 8], sizes = [2, 8, 8], strides = [1, 1, 1]} : vector<2x8x96xf32> to vector<2x8x8xf32>
    %cst_93 = arith.constant 0.353553385 : f32
    %237 = vector.broadcast %cst_93 : f32 to vector<2x8x8xf32>
    %238 = arith.mulf %236, %237 : vector<2x8x8xf32>
    %239 = vector.extract_strided_slice %212 {offsets = [0, 0, 40], sizes = [2, 8, 8], strides = [1, 1, 1]} : vector<2x8x96xf32> to vector<2x8x8xf32>
    %240 = vector.extract_strided_slice %212 {offsets = [0, 0, 72], sizes = [2, 8, 8], strides = [1, 1, 1]} : vector<2x8x96xf32> to vector<2x8x8xf32>
    "tpu.trace_start"() <{level = 10 : i32, message = "bqd,bkd->bqk"}> : () -> ()
    %cst_94 = arith.constant dense<0.000000e+00> : vector<2x8x8xf32>
    %241 = tpu.matmul %238, %239, %cst_94 {dimension_numbers = #tpu.dot_dimension_numbers<[2], [2], [1], [1], [0, 0, 0, 1, 1, 1], [0], [0]>} : vector<2x8x8xf32>, vector<2x8x8xf32>, vector<2x8x8xf32> -> vector<2x8x8xf32>
    %cst_95 = arith.constant -1.000000e+09 : f32
    "tpu.trace_stop"() : () -> ()
    %242 = vector.broadcast %cst_95 : f32 to vector<2x8x8xf32>
    %243 = arith.select %3, %242, %241 : vector<2x8x8xi1>, vector<2x8x8xf32>
    %cst_96 = arith.constant dense<0xFF800000> : vector<2x8xf32>
    %244 = vector.multi_reduction <maximumf>, %243, %cst_96 [2] : vector<2x8x8xf32> to vector<2x8xf32>
    %245 = vector.shape_cast %244 : vector<2x8xf32> to vector<2x8x1xf32>
    %246 = vector.broadcast %245 : vector<2x8x1xf32> to vector<2x8x8xf32>
    %247 = arith.subf %243, %246 : vector<2x8x8xf32>
    %248 = math.exp %247 : vector<2x8x8xf32>
    %cst_97 = arith.constant dense<0.000000e+00> : vector<2x8xf32>
    %249 = vector.multi_reduction <add>, %248, %cst_97 [2] : vector<2x8x8xf32> to vector<2x8xf32>
    %250 = vector.shape_cast %249 : vector<2x8xf32> to vector<2x8x1xf32>
    %251 = vector.broadcast %250 : vector<2x8x1xf32> to vector<2x8x8xf32>
    %252 = arith.divf %248, %251 : vector<2x8x8xf32>
    "tpu.trace_start"() <{level = 10 : i32, message = "bqk,bkd->bqd"}> : () -> ()
    %cst_98 = arith.constant dense<0.000000e+00> : vector<2x8x8xf32>
    %253 = tpu.matmul %252, %240, %cst_98 {dimension_numbers = #tpu.dot_dimension_numbers<[2], [1], [1], [2], [0, 0, 0, 1, 1, 2], [0], [0]>} : vector<2x8x8xf32>, vector<2x8x8xf32>, vector<2x8x8xf32> -> vector<2x8x8xf32>
    "tpu.trace_stop"() : () -> ()
    %254 = vector.shape_cast %253 : vector<2x8x8xf32> to vector<16x8xf32>
    %255 = vector.extract_strided_slice %182 {offsets = [8, 0], sizes = [8, 32], strides = [1, 1]} : vector<32x32xf32> to vector<8x32xf32>
    %cst_99 = arith.constant dense<0.000000e+00> : vector<16x32xf32>
    %256 = tpu.matmul %254, %255, %cst_99 {dimension_numbers = #tpu.dot_dimension_numbers<[1], [0], [0], [1], [0, 0, 1, 1], [], []>} : vector<16x8xf32>, vector<8x32xf32>, vector<16x32xf32> -> vector<16x32xf32>
    %257 = arith.addf %235, %256 : vector<16x32xf32>
    %258 = vector.extract_strided_slice %212 {offsets = [0, 0, 16], sizes = [2, 8, 8], strides = [1, 1, 1]} : vector<2x8x96xf32> to vector<2x8x8xf32>
    %cst_100 = arith.constant 0.353553385 : f32
    %259 = vector.broadcast %cst_100 : f32 to vector<2x8x8xf32>
    %260 = arith.mulf %258, %259 : vector<2x8x8xf32>
    %261 = vector.extract_strided_slice %212 {offsets = [0, 0, 48], sizes = [2, 8, 8], strides = [1, 1, 1]} : vector<2x8x96xf32> to vector<2x8x8xf32>
    %262 = vector.extract_strided_slice %212 {offsets = [0, 0, 80], sizes = [2, 8, 8], strides = [1, 1, 1]} : vector<2x8x96xf32> to vector<2x8x8xf32>
    "tpu.trace_start"() <{level = 10 : i32, message = "bqd,bkd->bqk"}> : () -> ()
    %cst_101 = arith.constant dense<0.000000e+00> : vector<2x8x8xf32>
    %263 = tpu.matmul %260, %261, %cst_101 {dimension_numbers = #tpu.dot_dimension_numbers<[2], [2], [1], [1], [0, 0, 0, 1, 1, 1], [0], [0]>} : vector<2x8x8xf32>, vector<2x8x8xf32>, vector<2x8x8xf32> -> vector<2x8x8xf32>
    %cst_102 = arith.constant -1.000000e+09 : f32
    "tpu.trace_stop"() : () -> ()
    %264 = vector.broadcast %cst_102 : f32 to vector<2x8x8xf32>
    %265 = arith.select %3, %264, %263 : vector<2x8x8xi1>, vector<2x8x8xf32>
    %cst_103 = arith.constant dense<0xFF800000> : vector<2x8xf32>
    %266 = vector.multi_reduction <maximumf>, %265, %cst_103 [2] : vector<2x8x8xf32> to vector<2x8xf32>
    %267 = vector.shape_cast %266 : vector<2x8xf32> to vector<2x8x1xf32>
    %268 = vector.broadcast %267 : vector<2x8x1xf32> to vector<2x8x8xf32>
    %269 = arith.subf %265, %268 : vector<2x8x8xf32>
    %270 = math.exp %269 : vector<2x8x8xf32>
    %cst_104 = arith.constant dense<0.000000e+00> : vector<2x8xf32>
    %271 = vector.multi_reduction <add>, %270, %cst_104 [2] : vector<2x8x8xf32> to vector<2x8xf32>
    %272 = vector.shape_cast %271 : vector<2x8xf32> to vector<2x8x1xf32>
    %273 = vector.broadcast %272 : vector<2x8x1xf32> to vector<2x8x8xf32>
    %274 = arith.divf %270, %273 : vector<2x8x8xf32>
    "tpu.trace_start"() <{level = 10 : i32, message = "bqk,bkd->bqd"}> : () -> ()
    %cst_105 = arith.constant dense<0.000000e+00> : vector<2x8x8xf32>
    %275 = tpu.matmul %274, %262, %cst_105 {dimension_numbers = #tpu.dot_dimension_numbers<[2], [1], [1], [2], [0, 0, 0, 1, 1, 2], [0], [0]>} : vector<2x8x8xf32>, vector<2x8x8xf32>, vector<2x8x8xf32> -> vector<2x8x8xf32>
    "tpu.trace_stop"() : () -> ()
    %276 = vector.shape_cast %275 : vector<2x8x8xf32> to vector<16x8xf32>
    %277 = vector.extract_strided_slice %182 {offsets = [16, 0], sizes = [8, 32], strides = [1, 1]} : vector<32x32xf32> to vector<8x32xf32>
    %cst_106 = arith.constant dense<0.000000e+00> : vector<16x32xf32>
    %278 = tpu.matmul %276, %277, %cst_106 {dimension_numbers = #tpu.dot_dimension_numbers<[1], [0], [0], [1], [0, 0, 1, 1], [], []>} : vector<16x8xf32>, vector<8x32xf32>, vector<16x32xf32> -> vector<16x32xf32>
    %279 = arith.addf %257, %278 : vector<16x32xf32>
    %280 = vector.extract_strided_slice %212 {offsets = [0, 0, 24], sizes = [2, 8, 8], strides = [1, 1, 1]} : vector<2x8x96xf32> to vector<2x8x8xf32>
    %cst_107 = arith.constant 0.353553385 : f32
    %281 = vector.broadcast %cst_107 : f32 to vector<2x8x8xf32>
    %282 = arith.mulf %280, %281 : vector<2x8x8xf32>
    %283 = vector.extract_strided_slice %212 {offsets = [0, 0, 56], sizes = [2, 8, 8], strides = [1, 1, 1]} : vector<2x8x96xf32> to vector<2x8x8xf32>
    %284 = vector.extract_strided_slice %212 {offsets = [0, 0, 88], sizes = [2, 8, 8], strides = [1, 1, 1]} : vector<2x8x96xf32> to vector<2x8x8xf32>
    "tpu.trace_start"() <{level = 10 : i32, message = "bqd,bkd->bqk"}> : () -> ()
    %cst_108 = arith.constant dense<0.000000e+00> : vector<2x8x8xf32>
    %285 = tpu.matmul %282, %283, %cst_108 {dimension_numbers = #tpu.dot_dimension_numbers<[2], [2], [1], [1], [0, 0, 0, 1, 1, 1], [0], [0]>} : vector<2x8x8xf32>, vector<2x8x8xf32>, vector<2x8x8xf32> -> vector<2x8x8xf32>
    %cst_109 = arith.constant -1.000000e+09 : f32
    "tpu.trace_stop"() : () -> ()
    %286 = vector.broadcast %cst_109 : f32 to vector<2x8x8xf32>
    %287 = arith.select %3, %286, %285 : vector<2x8x8xi1>, vector<2x8x8xf32>
    %cst_110 = arith.constant dense<0xFF800000> : vector<2x8xf32>
    %288 = vector.multi_reduction <maximumf>, %287, %cst_110 [2] : vector<2x8x8xf32> to vector<2x8xf32>
    %289 = vector.shape_cast %288 : vector<2x8xf32> to vector<2x8x1xf32>
    %290 = vector.broadcast %289 : vector<2x8x1xf32> to vector<2x8x8xf32>
    %291 = arith.subf %287, %290 : vector<2x8x8xf32>
    %292 = math.exp %291 : vector<2x8x8xf32>
    %cst_111 = arith.constant dense<0.000000e+00> : vector<2x8xf32>
    %293 = vector.multi_reduction <add>, %292, %cst_111 [2] : vector<2x8x8xf32> to vector<2x8xf32>
    %294 = vector.shape_cast %293 : vector<2x8xf32> to vector<2x8x1xf32>
    %295 = vector.broadcast %294 : vector<2x8x1xf32> to vector<2x8x8xf32>
    %296 = arith.divf %292, %295 : vector<2x8x8xf32>
    "tpu.trace_start"() <{level = 10 : i32, message = "bqk,bkd->bqd"}> : () -> ()
    %cst_112 = arith.constant dense<0.000000e+00> : vector<2x8x8xf32>
    %297 = tpu.matmul %296, %284, %cst_112 {dimension_numbers = #tpu.dot_dimension_numbers<[2], [1], [1], [2], [0, 0, 0, 1, 1, 2], [0], [0]>} : vector<2x8x8xf32>, vector<2x8x8xf32>, vector<2x8x8xf32> -> vector<2x8x8xf32>
    "tpu.trace_stop"() : () -> ()
    %298 = vector.shape_cast %297 : vector<2x8x8xf32> to vector<16x8xf32>
    %299 = vector.extract_strided_slice %182 {offsets = [24, 0], sizes = [8, 32], strides = [1, 1]} : vector<32x32xf32> to vector<8x32xf32>
    %cst_113 = arith.constant dense<0.000000e+00> : vector<16x32xf32>
    %300 = tpu.matmul %298, %299, %cst_113 {dimension_numbers = #tpu.dot_dimension_numbers<[1], [0], [0], [1], [0, 0, 1, 1], [], []>} : vector<16x8xf32>, vector<8x32xf32>, vector<16x32xf32> -> vector<16x32xf32>
    %301 = arith.addf %279, %300 : vector<16x32xf32>
    %302 = arith.addf %172, %301 : vector<16x32xf32>
    %303 = vector.broadcast %179 : vector<1x32xf32> to vector<16x32xf32>
    %304 = arith.addf %302, %303 : vector<16x32xf32>
    %cst_114 = arith.constant dense<0.000000e+00> : vector<16xf32>
    %305 = vector.multi_reduction <add>, %304, %cst_114 [1] : vector<16x32xf32> to vector<16xf32>
    %306 = vector.shape_cast %305 : vector<16xf32> to vector<16x1xf32>
    %cst_115 = arith.constant 3.200000e+01 : f32
    %307 = vector.broadcast %cst_115 : f32 to vector<16x1xf32>
    %308 = arith.divf %306, %307 : vector<16x1xf32>
    %309 = vector.broadcast %308 : vector<16x1xf32> to vector<16x32xf32>
    %310 = arith.subf %304, %309 : vector<16x32xf32>
    %311 = arith.mulf %310, %310 : vector<16x32xf32>
    %cst_116 = arith.constant dense<0.000000e+00> : vector<16xf32>
    %312 = vector.multi_reduction <add>, %311, %cst_116 [1] : vector<16x32xf32> to vector<16xf32>
    %313 = vector.shape_cast %312 : vector<16xf32> to vector<16x1xf32>
    %cst_117 = arith.constant 3.100000e+01 : f32
    %314 = vector.broadcast %cst_117 : f32 to vector<16x1xf32>
    %315 = arith.divf %313, %314 : vector<16x1xf32>
    %316 = math.sqrt %315 : vector<16x1xf32>
    %317 = vector.broadcast %306 : vector<16x1xf32> to vector<16x32xf32>
    %318 = arith.subf %304, %317 : vector<16x32xf32>
    %319 = vector.broadcast %177 : vector<1x32xf32> to vector<16x32xf32>
    %320 = arith.mulf %319, %318 : vector<16x32xf32>
    %cst_118 = arith.constant 9.99999997E-7 : f32
    %321 = vector.broadcast %cst_118 : f32 to vector<16x1xf32>
    %322 = arith.addf %316, %321 : vector<16x1xf32>
    %323 = vector.broadcast %322 : vector<16x1xf32> to vector<16x32xf32>
    %324 = arith.divf %320, %323 : vector<16x32xf32>
    %325 = vector.broadcast %178 : vector<1x32xf32> to vector<16x32xf32>
    %326 = arith.addf %324, %325 : vector<16x32xf32>
    %c1_119 = arith.constant 1 : index
    %c0_120 = arith.constant 0 : index
    %c0_121 = arith.constant 0 : index
    %327 = vector.load %arg5[%c1_119, %c0_120, %c0_121] : memref<2x32x64xf32, #tpu.memory_space<vmem>>, vector<1x32x64xf32>
    %328 = vector.shape_cast %327 : vector<1x32x64xf32> to vector<32x64xf32>
    %cst_122 = arith.constant dense<0.000000e+00> : vector<16x64xf32>
    %329 = tpu.matmul %326, %328, %cst_122 {dimension_numbers = #tpu.dot_dimension_numbers<[1], [0], [0], [1], [0, 0, 1, 1], [], []>} : vector<16x32xf32>, vector<32x64xf32>, vector<16x64xf32> -> vector<16x64xf32>
    %c1_123 = arith.constant 1 : index
    %c0_124 = arith.constant 0 : index
    %c0_125 = arith.constant 0 : index
    %330 = vector.load %arg6[%c1_123, %c0_124, %c0_125] : memref<2x1x64xf32, #tpu.memory_space<vmem>>, vector<1x1x64xf32>
    %331 = vector.shape_cast %330 : vector<1x1x64xf32> to vector<1x64xf32>
    %332 = vector.broadcast %331 : vector<1x64xf32> to vector<16x64xf32>
    %333 = arith.addf %329, %332 : vector<16x64xf32>
    %cst_126 = arith.constant 0.000000e+00 : f32
    %334 = vector.broadcast %cst_126 : f32 to vector<16x64xf32>
    %335 = arith.maximumf %333, %334 : vector<16x64xf32>
    %c1_127 = arith.constant 1 : index
    %c0_128 = arith.constant 0 : index
    %c0_129 = arith.constant 0 : index
    %336 = vector.load %arg7[%c1_127, %c0_128, %c0_129] : memref<2x64x32xf32, #tpu.memory_space<vmem>>, vector<1x64x32xf32>
    %337 = vector.shape_cast %336 : vector<1x64x32xf32> to vector<64x32xf32>
    %cst_130 = arith.constant dense<0.000000e+00> : vector<16x32xf32>
    %338 = tpu.matmul %335, %337, %cst_130 {dimension_numbers = #tpu.dot_dimension_numbers<[1], [0], [0], [1], [0, 0, 1, 1], [], []>} : vector<16x64xf32>, vector<64x32xf32>, vector<16x32xf32> -> vector<16x32xf32>
    %339 = vector.broadcast %180 : vector<1x32xf32> to vector<16x32xf32>
    %340 = arith.addf %338, %339 : vector<16x32xf32>
    %341 = arith.addf %304, %340 : vector<16x32xf32>
    %c0_131 = arith.constant 0 : index
    %c0_132 = arith.constant 0 : index
    %342 = vector.load %arg9[%c0_131, %c0_132] : memref<2x32xf32, #tpu.memory_space<vmem>>, vector<2x32xf32>
    %343 = vector.extract_strided_slice %342 {offsets = [0, 0], sizes = [1, 32], strides = [1, 1]} : vector<2x32xf32> to vector<1x32xf32>
    %344 = vector.extract_strided_slice %342 {offsets = [1, 0], sizes = [1, 32], strides = [1, 1]} : vector<2x32xf32> to vector<1x32xf32>
    %cst_133 = arith.constant dense<0.000000e+00> : vector<16xf32>
    %345 = vector.multi_reduction <add>, %341, %cst_133 [1] : vector<16x32xf32> to vector<16xf32>
    %346 = vector.shape_cast %345 : vector<16xf32> to vector<16x1xf32>
    %cst_134 = arith.constant 3.200000e+01 : f32
    %347 = vector.broadcast %cst_134 : f32 to vector<16x1xf32>
    %348 = arith.divf %346, %347 : vector<16x1xf32>
    %349 = vector.broadcast %348 : vector<16x1xf32> to vector<16x32xf32>
    %350 = arith.subf %341, %349 : vector<16x32xf32>
    %351 = arith.mulf %350, %350 : vector<16x32xf32>
    %cst_135 = arith.constant dense<0.000000e+00> : vector<16xf32>
    %352 = vector.multi_reduction <add>, %351, %cst_135 [1] : vector<16x32xf32> to vector<16xf32>
    %353 = vector.shape_cast %352 : vector<16xf32> to vector<16x1xf32>
    %cst_136 = arith.constant 3.100000e+01 : f32
    %354 = vector.broadcast %cst_136 : f32 to vector<16x1xf32>
    %355 = arith.divf %353, %354 : vector<16x1xf32>
    %356 = math.sqrt %355 : vector<16x1xf32>
    %357 = vector.broadcast %346 : vector<16x1xf32> to vector<16x32xf32>
    %358 = arith.subf %341, %357 : vector<16x32xf32>
    %359 = vector.broadcast %343 : vector<1x32xf32> to vector<16x32xf32>
    %360 = arith.mulf %359, %358 : vector<16x32xf32>
    %cst_137 = arith.constant 9.99999997E-7 : f32
    %361 = vector.broadcast %cst_137 : f32 to vector<16x1xf32>
    %362 = arith.addf %356, %361 : vector<16x1xf32>
    %363 = vector.broadcast %362 : vector<16x1xf32> to vector<16x32xf32>
    %364 = arith.divf %360, %363 : vector<16x32xf32>
    %365 = vector.broadcast %344 : vector<1x32xf32> to vector<16x32xf32>
    %366 = arith.addf %364, %365 : vector<16x32xf32>
    %c0_138 = arith.constant 0 : index
    %c0_139 = arith.constant 0 : index
    %367 = vector.load %arg10[%c0_138, %c0_139] : memref<16x32xf32, #tpu.memory_space<vmem>>, vector<16x32xf32>
    tpu.vector_store %arg10[%c0_138, %c0_139], %366 {strides = array<i32>} : memref<16x32xf32, #tpu.memory_space<vmem>>, vector<16x32xf32>,
    return
  }
}

</mosaic_0001>

<bundles_post_ra>
// kernel: encoder_forward.1
= control target key start
LH: loop header
LB: loop body
LE: loop exit
PB: predicated region body
PF: predicated region fallthrough
CT: control target
= control target key end

     0   :  { %15 = vsyncpa [#allocation3], 0  ;;  %s5825_s0 = inlined_call_operand.hbm [shape: f32[16,32], index: 0, kind: input, shape index: {}]   ;;  %s5826_s1 = inlined_call_operand.hbm [shape: f32[2,8,8], index: 1, kind: input, shape index: {}]   ;;  %s5827_s2 = inlined_call_operand.vmem [shape: f32[2,32,96], index: 2, kind: input, shape index: {}]   ;;  %s5828_s3 = inlined_call_operand.vmem [shape: f32[2,1,96], index: 3, kind: input, shape index: {}]   ;;  %s5829_s4 = inlined_call_operand.vmem [shape: f32[2,32,32], index: 4, kind: input, shape index: {}]   ;;  %s5830_s5 = inlined_call_operand.vmem [shape: f32[2,32,64], index: 5, kind: input, shape index: {}]   ;;  %s5831_s6 = inlined_call_operand.vmem [shape: f32[2,1,64], index: 6, kind: input, shape index: {}]   ;;  %s5832_s7 = inlined_call_operand.vmem [shape: f32[2,64,32], index: 7, kind: input, shape index: {}]   ;;  %s5833_s8 = inlined_call_operand.vmem [shape: f32[2,8,32], index: 8, kind: input, shape index: {}]   ;;  %s5834_s9 = inlined_call_operand.vmem [shape: f32[2,32], index: 9, kind: input, shape index: {}]   ;;  %s5835_s10 = inlined_call_operand.hbm [shape: f32[16,32], index: 10, kind: output, shape index: {}]  }
   0x1   :  { %16 = vsyncpa [#allocation6], 0 }
   0x2   :  { %17 = vsyncpa [#allocation4], 0  ;;  %s5064_s13 = smov [#allocation2]   ;;  %s4992_s17 = scalar_lea.hbm %s5825_s0, 256 }
   0x3   :  { %s23_s14 = sshll.u32 %s5064_s13, 4  ;;  %p4993_p0 = scmp.ne.s32.totalorder %s5825_s0, %s4992_s17  ;;  %s24_s14 = int_to_ptr.vmem [resolvable:$true] %s23_s14 }
   0x4   :  { %p4996_p1 = scmp.lt.u32.totalorder %s4992_s17, %s5825_s0 }
   0x6   :  { %p4998_p2 = pnand %p4996_p1, %p4993_p0 }
   0x8   :  { %5001 = shalt.err (!%p4998_p2)
}
   0x9   :  { %s5002_s22 = scalar_lea.vmem %s24_s14, 256  ;;  %p5007_p4 = scmp.lt.s32.totalorder %s24_s14, %s24_s14 }
   0xa   :  { %p5003_p3 = scmp.ne.s32.totalorder %s24_s14, %s5002_s22  ;;  %p5008_p5 = scmp.lt.s32.totalorder %s5002_s22, %s5002_s22 }
   0xc   :  { %p5009_p6 = por %p5008_p5, %p5007_p4 }
   0xe   :  { %p5010_p7 = pnand %p5009_p6, %p5003_p3 }
  0x10   :  { %5013 = shalt.err (!%p5010_p7)
}
  0x11   :  { %s5836_s23 = smov 128   ;;  %s5066_s24 = smov 8  }
  0x12   :  { %29 = dma.hbm_to_vmem [thread:$0]  %s5825_s0, 256, %s24_s14, [#allocation3], %s5836_s23, %s5836_s23, %s5066_s24  }
  0x13   :  { %s5067_s27 = smov [#allocation5]   ;;  %s5014_s11 = scalar_lea.hbm %s5826_s1, 256 }
  0x14   :  { %s35_s28 = sshll.u32 %s5067_s27, 4  ;;  %p5015_p8 = scmp.ne.s32.totalorder %s5826_s1, %s5014_s11  ;;  %s36_s28 = int_to_ptr.vmem [resolvable:$true] %s35_s28 }
  0x15   :  { %p5018_p9 = scmp.lt.u32.totalorder %s5014_s11, %s5826_s1 }
  0x17   :  { %p5020_p10 = pnand %p5018_p9, %p5015_p8 }
  0x19   :  { %5023 = shalt.err (!%p5020_p10)
}
  0x1a   :  { %s5024_s17 = scalar_lea.vmem %s36_s28, 256  ;;  %p5029_p12 = scmp.lt.s32.totalorder %s36_s28, %s36_s28 }
  0x1b   :  { %p5025_p11 = scmp.ne.s32.totalorder %s36_s28, %s5024_s17  ;;  %p5030_p13 = scmp.lt.s32.totalorder %s5024_s17, %s5024_s17 }
  0x1d   :  { %p5031_p0 = por %p5030_p13, %p5029_p12 }
  0x1f   :  { %p5032_p1 = pnand %p5031_p0, %p5025_p11 }
  0x21   :  { %5035 = shalt.err (!%p5032_p1)
}
  0x22   :  { %41 = dma.hbm_to_vmem [thread:$0]  %s5826_s1, 256, %s36_s28, [#allocation6], %s5836_s23, %s5836_s23, %s5066_s24  }
  0x23   :  { %5058 = dma.done.wait [#allocation3], 256  }
  0x24   :  { %5059 = vsyncadd [#allocation3], 4294967040 }
  0x25   :  { %5060 = dma.done.wait [#allocation6], 256  }
  0x26   :  { %5061 = vsyncadd [#allocation6], 4294967040  ;;  %vm75_vm0 = vcmask 261120   ;;  %v5167_v0 = vld [vmem:[#allocation2] sm:$0xff]  ;;  %v5169_v1 = vld [vmem:[#allocation2 + $0x8] sm:$0xff]  ;;  %v114_v25 = vlaneseq  ;;  %v5068_v53 = vmov 0.0  }
  0x27   :  { %v76_v2 = vsel %vm75_vm0, %v5167_v0, 0.0  ;;  %v79_v3 = vsel %vm75_vm0, %v5169_v1, 0.0  ;;  %v132_v14 = vld [vmem:[%s5827_s2] sm:$0xff]  ;;  %v133_v15 = vld [vmem:[%s5827_s2 + $0x8] sm:$0xff]  ;;  %v134_v16 = vld [vmem:[%s5827_s2 + $0x10] sm:$0xff]  ;;  %4533 = vmatprep.subr.mxu0 %v5068_v53  ;;  %vm5069_vm5 = vmmov 0  }
  0x28   :  { %77 = vadd.xlane.f32.xlu0 %v76_v2  ;;  %v4794_v17 = vpack.c.bf16 %v133_v15, %v132_v14  ;;  %v135_v18 = vld [vmem:[%s5827_s2 + $0x18] sm:$0xff]  ;;  %v5191_v30 = vshrl.u32 %v114_v25, 7  ;;  %v5199_v38 = vld [vmem:[%s5833_s8] sm:$0xff]  ;;  %4535 = vmatprep.mubr.msk.f32.mxu0 %vm5069_vm5, %v5068_v53  ;;  %s5070_s11 = smov 96   ;;  %vm229_vm6 = vcmask 64512   ;;  %s5071_s12 = smov 88  }
  0x29   :  { %v4798_v19 = vpack.c.bf16 %v135_v18, %v134_v16  ;;  %v4277_v54 = vld [vmem:[%s5828_s3] ss:$0 sm:$0xff]  ;;  %v5247_v63 = vld [vmem:[#allocation5 + $0x8] sm:$0xff]  ;;  %s5072_s13 = smov 120   ;;  %s5073_s15 = smov 80   ;;  %vm2051_vm13 = vcmask 523264  }
  0x2a   :  { %4795 = vmatprep.subr.bf16.mxu1 %v4794_v17  ;;  %v5194_v36 = vsub.s32 0, %v5191_v30  ;;  %v5205_v42 = vsub.s32 1, %v5191_v30  ;;  %vm69_vm7 = vcmp.eq.f32.partialorder %v5247_v63, 0.0  ;;  %s5074_s16 = smov 64   ;;  %s5075_s17 = smov 56  }
  0x2b   :  { %4797 = vmatpush3.bf16.msra.mxu1 %v4794_v17  ;;  %s5076_s0 = smov 112   ;;  %s5077_s14 = smov 48  }
  0x2c   :  { %80 = vadd.xlane.f32.xlu0 %v79_v3  ;;  %4799 = vmatprep.subr.bf16.mxu1 %v4798_v19  ;;  %v117_v40 = vrot.slane %v5199_v38, %v5194_v36  ;;  %v129_v45 = vrot.slane %v5199_v38, %v5205_v42  ;;  %s5078_s1 = smov 72   ;;  %s5079_s18 = smov 104  }
  0x2d   :  { %s5080_s27 = smov 40  }
  0x2f   :  { %4801 = vmatpush3.bf16.msra.mxu1 %v4798_v19 }
  0x30   :  { %4523 = vmatprep.subr.mxu1 %v5068_v53 }
  0xb5   :  { %v78_v4 = vpop.xlane.xlu0 %77 }
  0xb6   :  { %v83_v5 = vmul.f32 0.03125, %v78_v4  ;;  %v112_v41 = vsub.f32 %v5167_v0, %v78_v4 }
  0xb8   :  { %v85_v6 = vsub.f32 %v5167_v0, %v83_v5  ;;  %v118_v43 = vmul.f32 %v117_v40, %v112_v41 }
  0xb9   :  { %v81_v7 = vpop.xlane.xlu0 %80 }
  0xba   :  { %v84_v8 = vmul.f32 0.03125, %v81_v7  ;;  %v87_v9 = vmul.f32 %v85_v6, %v85_v6  ;;  %v113_v44 = vsub.f32 %v5169_v1, %v81_v7 }
  0xbc   :  { %v89_v10 = vsel %vm75_vm0, %v87_v9, 0.0  ;;  %v86_v11 = vsub.f32 %v5169_v1, %v84_v8  ;;  %v119_v48 = vmul.f32 %v117_v40, %v113_v44  ;;  %v5257_v8 = vld [vmem:[#allocation5] sm:$0xff] }
  0xbd   :  { %90 = vadd.xlane.f32.xlu1 %v89_v10  ;;  %vm68_vm8 = vcmp.eq.f32.partialorder %v5257_v8, 0.0 }
  0xbe   :  { %v88_v12 = vmul.f32 %v86_v11, %v86_v11 }
  0xc0   :  { %v92_v13 = vsel %vm75_vm0, %v88_v12, 0.0 }
  0xc1   :  { %93 = vadd.xlane.f32.xlu1 %v92_v13 }
 0x14a   :  { %v91_v20 = vpop.xlane.xlu1 %90 }
 0x14b   :  { %v96_v21 = vmul.f32 0.032258064, %v91_v20 }
 0x14d   :  { %4888 = vrsqrt.f32 %v96_v21  ;;  %vm100_vm1 = vcmp.eq.f32.partialorder %v96_v21, inf  ;;  %v103_v27 = vand.u32 2147483648, %v96_v21  ;;  %vm102_vm2 = vcmp.eq.f32.partialorder %v96_v21, 0.0 }
 0x14e   :  { %v94_v22 = vpop.xlane.xlu1 %93 }
 0x14f   :  { %v97_v23 = vmul.f32 0.032258064, %v94_v22 }
 0x151   :  { %4890 = vrsqrt.f32 %v97_v23  ;;  %vm107_vm3 = vcmp.eq.f32.partialorder %v97_v23, inf  ;;  %v110_v34 = vand.u32 2147483648, %v97_v23  ;;  %vm109_vm4 = vcmp.eq.f32.partialorder %v97_v23, 0.0 }
 0x157   :  { %v4889_v24 = vpop.eup %4888 }
 0x158   :  { %v99_v26 = vmul.f32 %v4889_v24, %v96_v21 }
 0x15a   :  { %v101_v28 = vsel %vm100_vm1, %v96_v21, %v99_v26 }
 0x15b   :  { %v4891_v29 = vpop.eup %4890  ;;  %v104_v31 = vsel %vm102_vm2, %v103_v27, %v101_v28 }
 0x15c   :  { %v106_v32 = vmul.f32 %v4891_v29, %v97_v23  ;;  %v120_v33 = vadd.f32 1e-06, %v104_v31 }
 0x15e   :  { %v108_v35 = vsel %vm107_vm3, %v97_v23, %v106_v32  ;;  %4892 = vrcp.f32 %v120_v33 }
 0x15f   :  { %v111_v37 = vsel %vm109_vm4, %v110_v34, %v108_v35 }
 0x160   :  { %v121_v39 = vadd.f32 1e-06, %v111_v37 }
 0x162   :  { %4894 = vrcp.f32 %v121_v39 }
 0x168   :  { %v4893_v46 = vpop.eup %4892 }
 0x169   :  { %v123_v47 = vmul.f32 %v4893_v46, %v118_v43 }
 0x16b   :  { %v130_v49 = vadd.f32 %v129_v45, %v123_v47 }
 0x16c   :  { %v4895_v50 = vpop.eup %4894 }
 0x16d   :  { %v125_v51 = vmul.f32 %v4895_v50, %v119_v48  ;;  %4520 = vmatprep.mubr.msk.f32.mxu1 %vm75_vm0, %v130_v49 }
 0x16f   :  { %v131_v52 = vadd.f32 %v129_v45, %v125_v51 }
 0x171   :  { %4521 = vmatmul.mubr.msk.f32.vlgmr.msra.gmra.mrb[0].mxu1 %vm75_vm0, %v131_v52 }
 0x172   :  { %4525 = vmatprep.mubr.msk.f32.mxu1 %vm5069_vm5, %v5068_v53 }
 0x244   :  { %v4522_v55 = vpop.f32.mrb[0].mxu1 }
 0x245   :  { %v5221_v56 = vadd.f32 %v4522_v55, %v4277_v54  ;;  %v215_v57 = vpop.f32.mrb[1].mxu1 }
 0x246   :  { %v5223_v58 = vadd.f32 %v4277_v54, %v215_v57 }
 0x247   :  { %306 = vrot.lane.b32.xlu1 %v5221_v56, %s5070_s11  ;;  %v5240_v62 = vmul.f32 0.35355338, %v5221_v56 }
 0x248   :  { %227 = vrot.lane.b32.xlu0 %v5223_v58, %s5070_s11  ;;  %v5231_v60 = vmul.f32 0.35355338, %v5223_v58 }
 0x2b9   :  { %v307_v61 = vpop.permute.xlu1 %306 }
 0x2ba   :  { %v228_v59 = vpop.permute.xlu0 %227 }
 0x2bb   :  { %4524 = vmatpush3.xpose.msk.msra.mxu1 %vm229_vm6, %v228_v59 }
 0x2bc   :  { %4528 = vmatprep.subr.mxu1 %v5068_v53 }
 0x2be   :  { %4526 = vmatmul.mubr.msk.f32.vlgmr.msra.gmra.mrb[2].mxu1 %vm229_vm6, %v5231_v60 }
 0x2bf   :  { %4529 = vmatpush3.xpose.msk.msra.mxu1 %vm229_vm6, %v307_v61  ;;  %4530 = vmatprep.mubr.msk.f32.mxu1 %vm5069_vm5, %v5068_v53 }
 0x2c0   :  { %4538 = vmatprep.subr.mxu1 %v5068_v53 }
 0x2c2   :  { %4531 = vmatmul.mubr.msk.f32.vlgmr.msra.gmra.mrb[4].mxu1 %vm229_vm6, %v5240_v62 }
 0x2c3   :  { %4540 = vmatprep.mubr.msk.f32.mxu1 %vm5069_vm5, %v5068_v53 }
 0x391   :  { %v301_v2 = vpop.f32.mrb[2].mxu1 }
 0x392   :  { %v4527_v3 = vpop.f32.mrb[3].mxu1  ;;  %v383_v9 = vsel %vm68_vm8, -1e+09, %v301_v2 }
 0x393   :  { %v385_v10 = vsel %vm229_vm6, %v383_v9, -inf }
 0x395   :  { %v379_v4 = vpop.f32.mrb[4].mxu1 }
 0x396   :  { %v384_v5 = vsel %vm69_vm7, -1e+09, %v379_v4  ;;  %v4532_v6 = vpop.f32.mrb[5].mxu1 }
 0x397   :  { %v388_v7 = vsel %vm229_vm6, %v384_v5, -inf }
 0x398   :  { %389 = vmax.xlane.f32.xlu1 %v388_v7 }
 0x3a9   :  { %639 = vrot.lane.b32.xlu1 %v5221_v56, %s5071_s12 }
 0x3ad   :  { %637 = vrot.lane.b32.xlu1 %v5240_v62, %s5072_s13 }
 0x3d1   :  { %386 = vmax.xlane.f32.xlu1 %v385_v10 }
 0x3e2   :  { %561 = vrot.lane.b32.xlu1 %v5223_v58, %s5071_s12 }
 0x3e6   :  { %559 = vrot.lane.b32.xlu1 %v5231_v60, %s5072_s13 }
 0x3ea   :  { %1055 = vrot.lane.b32.xlu1 %v5223_v58, %s5073_s15 }
 0x425   :  { %v390_v11 = vpop.xlane.xlu1 %389 }
 0x426   :  { %v392_v12 = vsub.f32 %v384_v5, %v390_v11 }
 0x428   :  { %v395_v13 = vmul.f32 1.442695, %v392_v12 }
 0x429   :  { %v640_v16 = vpop.permute.xlu1 %639 }
 0x42a   :  { %4896 = vpow2.f32 %v395_v13 }
 0x42d   :  { %v638_v17 = vpop.permute.xlu1 %637 }
 0x434   :  { %v4897_v14 = vpop.eup %4896 }
 0x435   :  { %v400_v15 = vsel %vm229_vm6, %v4897_v14, 0.0 }
 0x436   :  { %401 = vadd.xlane.f32.xlu0 %v400_v15 }
 0x44c   :  { %483 = vrot.lane.b32.xlu0 %v5221_v56, %s5074_s16 }
 0x45e   :  { %v387_v18 = vpop.xlane.xlu1 %386 }
 0x45f   :  { %v391_v19 = vsub.f32 %v383_v9, %v387_v18 }
 0x461   :  { %v393_v20 = vmul.f32 1.442695, %v391_v19 }
 0x462   :  { %v562_v31 = vpop.permute.xlu1 %561 }
 0x463   :  { %4898 = vpow2.f32 %v393_v20 }
 0x466   :  { %v560_v33 = vpop.permute.xlu1 %559 }
 0x46a   :  { %v1056_v57 = vpop.permute.xlu1 %1055 }
 0x46d   :  { %v4899_v21 = vpop.eup %4898 }
 0x46e   :  { %v397_v22 = vsel %vm229_vm6, %v4899_v21, 0.0 }
 0x46f   :  { %398 = vadd.xlane.f32.xlu0 %v397_v22 }
 0x485   :  { %407 = vrot.lane.b32.xlu0 %v5223_v58, %s5074_s16 }
 0x4c3   :  { %v402_v23 = vpop.xlane.xlu0 %401 }
 0x4c4   :  { %4900 = vrcp.f32 %v402_v23 }
 0x4c7   :  { %v484_v24 = vpop.permute.xlu0 %483 }
 0x4c8   :  { %4539 = vmatpush3.msra.mxu1 %v484_v24 }
 0x4c9   :  { %4548 = vmatprep.subr.mxu1 %v5068_v53 }
 0x4ce   :  { %v4901_v25 = vpop.eup %4900 }
 0x4cf   :  { %v406_v26 = vmul.f32 %v4901_v25, %v4897_v14 }
 0x4d1   :  { %4541 = vmatmul.mubr.msk.f32.vlgmr.msra.gmra.mrb[6].mxu1 %vm229_vm6, %v406_v26  ;;  %v72_v26 = vld [vmem:[%s5829_s4 + $0x8] sm:$0xff] }
 0x4d2   :  { %4549 = vmatpush3.xpose.msk.msra.mxu1 %vm229_vm6, %v640_v16  ;;  %4550 = vmatprep.mubr.msk.f32.mxu1 %vm5069_vm5, %v5068_v53 }
 0x4d3   :  { %4558 = vmatprep.subr.mxu1 %v5068_v53 }
 0x4d5   :  { %4551 = vmatmul.mubr.msk.f32.vlgmr.msra.gmra.mrb[8].mxu1 %vm229_vm6, %v638_v17 }
 0x4d6   :  { %4560 = vmatprep.mubr.msk.f32.mxu1 %vm5069_vm5, %v5068_v53 }
 0x4fc   :  { %v399_v27 = vpop.xlane.xlu0 %398 }
 0x4fd   :  { %4902 = vrcp.f32 %v399_v27  ;;  %v71_v27 = vld [vmem:[%s5829_s4] sm:$0xff] }
 0x500   :  { %v408_v28 = vpop.permute.xlu0 %407 }
 0x501   :  { %4534 = vmatpush3.msra.mxu0 %v408_v28 }
 0x502   :  { %4543 = vmatprep.subr.mxu0 %v5068_v53 }
 0x507   :  { %v4903_v29 = vpop.eup %4902 }
 0x508   :  { %v404_v32 = vmul.f32 %v4903_v29, %v4899_v21 }
 0x50a   :  { %4536 = vmatmul.mubr.msk.f32.vlgmr.msra.gmra.mrb[0].mxu0 %vm229_vm6, %v404_v32 }
 0x50b   :  { %4544 = vmatpush3.xpose.msk.msra.mxu0 %vm229_vm6, %v562_v31  ;;  %4545 = vmatprep.mubr.msk.f32.mxu0 %vm5069_vm5, %v5068_v53 }
 0x50c   :  { %4553 = vmatprep.subr.mxu0 %v5068_v53 }
 0x50e   :  { %4546 = vmatmul.mubr.msk.f32.vlgmr.msra.gmra.mrb[2].mxu0 %vm229_vm6, %v560_v33 }
 0x50f   :  { %4555 = vmatprep.mubr.msk.f32.mxu0 %vm5069_vm5, %v5068_v53 }
 0x5a4   :  { %v5293_v34 = vpop.f32.mrb[6].mxu1 }
 0x5a5   :  { %v4542_v35 = vpop.f32.mrb[7].mxu1 }
 0x5a8   :  { %v711_v37 = vpop.f32.mrb[8].mxu1 }
 0x5a9   :  { %v716_v39 = vsel %vm69_vm7, -1e+09, %v711_v37  ;;  %v4552_v40 = vpop.f32.mrb[9].mxu1 }
 0x5aa   :  { %v720_v41 = vsel %vm229_vm6, %v716_v39, -inf }
 0x5ab   :  { %721 = vmax.xlane.f32.xlu0 %v720_v41 }
 0x5c1   :  { %815 = vrot.lane.b32.xlu0 %v5221_v56, %s5075_s17 }
 0x5c5   :  { %1053 = vrot.lane.b32.xlu0 %v5231_v60, %s5076_s0 }
 0x5c9   :  { %1131 = vrot.lane.b32.xlu0 %v5240_v62, %s5076_s0 }
 0x5dd   :  { %v5304_v43 = vpop.f32.mrb[0].mxu0 }
 0x5de   :  { %v4537_v44 = vpop.f32.mrb[1].mxu0 }
 0x5e1   :  { %v633_v45 = vpop.f32.mrb[2].mxu0 }
 0x5e2   :  { %v4547_v46 = vpop.f32.mrb[3].mxu0  ;;  %v715_v54 = vsel %vm68_vm8, -1e+09, %v633_v45 }
 0x5e3   :  { %v717_v55 = vsel %vm229_vm6, %v715_v54, -inf }
 0x638   :  { %v722_v47 = vpop.xlane.xlu0 %721 }
 0x639   :  { %v724_v48 = vsub.f32 %v716_v39, %v722_v47  ;;  %v73_v47 = vld [vmem:[%s5829_s4 + $0x10] sm:$0xff] }
 0x63b   :  { %v727_v49 = vmul.f32 1.442695, %v724_v48 }
 0x63c   :  { %v816_v50 = vpop.permute.xlu0 %815 }
 0x63d   :  { %4904 = vpow2.f32 %v727_v49  ;;  %4559 = vmatpush3.msra.mxu1 %v816_v50 }
 0x63e   :  { %4573 = vmatprep.subr.mxu1 %v5068_v53 }
 0x640   :  { %v1054_v3 = vpop.permute.xlu0 %1053 }
 0x644   :  { %v1132_v5 = vpop.permute.xlu0 %1131 }
 0x647   :  { %v4905_v51 = vpop.eup %4904 }
 0x648   :  { %v732_v52 = vsel %vm229_vm6, %v4905_v51, 0.0 }
 0x649   :  { %733 = vadd.xlane.f32.xlu1 %v732_v52 }
 0x65a   :  { %1133 = vrot.lane.b32.xlu1 %v5221_v56, %s5073_s15 }
 0x67e   :  { %718 = vmax.xlane.f32.xlu1 %v717_v55 }
 0x6d6   :  { %v734_v59 = vpop.xlane.xlu1 %733 }
 0x6d7   :  { %4906 = vrcp.f32 %v734_v59 }
 0x6da   :  { %v1134_v4 = vpop.permute.xlu1 %1133 }
 0x6e1   :  { %v4907_v61 = vpop.eup %4906 }
 0x6e2   :  { %v738_v2 = vmul.f32 %v4907_v61, %v4905_v51 }
 0x6e4   :  { %4561 = vmatmul.mubr.msk.f32.vlgmr.msra.gmra.mrb[10].mxu1 %vm229_vm6, %v738_v2 }
 0x6e5   :  { %4574 = vmatpush3.xpose.msk.msra.mxu1 %vm229_vm6, %v1056_v57  ;;  %4575 = vmatprep.mubr.msk.f32.mxu1 %vm5069_vm5, %v5068_v53 }
 0x6e6   :  { %4578 = vmatprep.subr.mxu1 %v5068_v53 }
 0x6e8   :  { %4576 = vmatmul.mubr.msk.f32.vlgmr.msra.gmra.mrb[12].mxu1 %vm229_vm6, %v1054_v3 }
 0x6e9   :  { %4579 = vmatpush3.xpose.msk.msra.mxu1 %vm229_vm6, %v1134_v4  ;;  %4580 = vmatprep.mubr.msk.f32.mxu1 %vm5069_vm5, %v5068_v53 }
 0x6ea   :  { %4588 = vmatprep.subr.mxu1 %v5068_v53 }
 0x6ec   :  { %4581 = vmatmul.mubr.msk.f32.vlgmr.msra.gmra.mrb[14].mxu1 %vm229_vm6, %v1132_v5 }
 0x6ed   :  { %4590 = vmatprep.mubr.msk.f32.mxu1 %vm5069_vm5, %v5068_v53 }
 0x70b   :  { %v719_v6 = vpop.xlane.xlu1 %718 }
 0x70c   :  { %v723_v7 = vsub.f32 %v715_v54, %v719_v6 }
 0x70e   :  { %v725_v9 = vmul.f32 1.442695, %v723_v7 }
 0x710   :  { %4908 = vpow2.f32 %v725_v9 }
 0x71a   :  { %v4909_v10 = vpop.eup %4908 }
 0x71b   :  { %v729_v11 = vsel %vm229_vm6, %v4909_v10, 0.0 }
 0x71c   :  { %730 = vadd.xlane.f32.xlu0 %v729_v11 }
 0x732   :  { %739 = vrot.lane.b32.xlu0 %v5223_v58, %s5075_s17 }
 0x736   :  { %1309 = vrot.lane.b32.xlu0 %v5221_v56, %s5077_s14 }
 0x73a   :  { %1470 = vrot.lane.b32.xlu0 %v5223_v58, %s5078_s1 }
 0x73e   :  { %1548 = vrot.lane.b32.xlu0 %v5221_v56, %s5078_s1 }
 0x742   :  { %1468 = vrot.lane.b32.xlu0 %v5231_v60, %s5079_s18 }
 0x7a9   :  { %v731_v12 = vpop.xlane.xlu0 %730 }
 0x7aa   :  { %4910 = vrcp.f32 %v731_v12 }
 0x7ad   :  { %v740_v13 = vpop.permute.xlu0 %739 }
 0x7ae   :  { %4554 = vmatpush3.msra.mxu0 %v740_v13 }
 0x7af   :  { %4563 = vmatprep.subr.mxu0 %v72_v26 }
 0x7b1   :  { %v1310_v14 = vpop.permute.xlu0 %1309 }
 0x7b2   :  { %4589 = vmatpush3.msra.mxu1 %v1310_v14 }
 0x7b3   :  { %4598 = vmatprep.subr.mxu1 %v5068_v53 }
 0x7b4   :  { %v4911_v15 = vpop.eup %4910 }
 0x7b5   :  { %v736_v16 = vmul.f32 %v4911_v15, %v4909_v10  ;;  %v1471_v49 = vpop.permute.xlu0 %1470 }
 0x7b7   :  { %4556 = vmatmul.mubr.msk.f32.vlgmr.msra.gmra.mrb[4].mxu0 %vm229_vm6, %v736_v16  ;;  %v887_v17 = vpop.f32.mrb[10].mxu1 }
 0x7b8   :  { %v4562_v18 = vpop.f32.mrb[11].mxu1  ;;  %4564 = vmatpush3.msra.mxu0 %v72_v26 }
 0x7b9   :  { %4568 = vmatprep.subr.mxu0 %v71_v27  ;;  %v1549_v51 = vpop.permute.xlu0 %1548 }
 0x7bb   :  { %v1127_v19 = vpop.f32.mrb[12].mxu1 }
 0x7bc   :  { %v1209_v20 = vsel %vm68_vm8, -1e+09, %v1127_v19  ;;  %v4577_v21 = vpop.f32.mrb[13].mxu1 }
 0x7bd   :  { %v1211_v60 = vsel %vm229_vm6, %v1209_v20, -inf  ;;  %v1469_v54 = vpop.permute.xlu0 %1468 }
 0x7be   :  { %1212 = vmax.xlane.f32.xlu1 %v1211_v60 }
 0x7bf   :  { %v1205_v22 = vpop.f32.mrb[14].mxu1 }
 0x7c0   :  { %v1210_v23 = vsel %vm69_vm7, -1e+09, %v1205_v22  ;;  %v4582_v24 = vpop.f32.mrb[15].mxu1 }
 0x7c1   :  { %v1214_v25 = vsel %vm229_vm6, %v1210_v23, -inf }
 0x7c2   :  { %1215 = vmax.xlane.f32.xlu1 %v1214_v25 }
 0x84b   :  { %v1213_v28 = vpop.xlane.xlu1 %1212 }
 0x84c   :  { %v1217_v29 = vsub.f32 %v1209_v20, %v1213_v28  ;;  %v74_v28 = vld [vmem:[%s5829_s4 + $0x18] sm:$0xff] }
 0x84e   :  { %v1219_v31 = vmul.f32 1.442695, %v1217_v29 }
 0x84f   :  { %v1216_v32 = vpop.xlane.xlu1 %1215 }
 0x850   :  { %4912 = vpow2.f32 %v1219_v31  ;;  %v1218_v33 = vsub.f32 %v1210_v23, %v1216_v32 }
 0x852   :  { %v1221_v35 = vmul.f32 1.442695, %v1218_v33  ;;  %v1887_v33 = vsub.s32 4, %v5191_v30 }
 0x854   :  { %4914 = vpow2.f32 %v1221_v35  ;;  %v1888_v35 = vrot.slane %v5199_v38, %v1887_v33 }
 0x85a   :  { %v4913_v37 = vpop.eup %4912 }
 0x85b   :  { %v1223_v39 = vsel %vm229_vm6, %v4913_v37, 0.0 }
 0x85c   :  { %1224 = vadd.xlane.f32.xlu1 %v1223_v39 }
 0x85e   :  { %v4915_v40 = vpop.eup %4914 }
 0x85f   :  { %v1226_v41 = vsel %vm229_vm6, %v4915_v40, 0.0 }
 0x860   :  { %1227 = vadd.xlane.f32.xlu1 %v1226_v41 }
 0x871   :  { %1233 = vrot.lane.b32.xlu1 %v5223_v58, %s5077_s14 }
 0x875   :  { %1546 = vrot.lane.b32.xlu1 %v5240_v62, %s5079_s18 }
 0x88a   :  { %v811_v44 = vpop.f32.mrb[4].mxu0 }
 0x88b   :  { %v4557_v45 = vpop.f32.mrb[5].mxu0  ;;  %4565 = vmatprep.mubr.msk.f32.mxu0 %vm229_vm6, %v811_v44 }
 0x88c   :  { %4566 = vmatmul.mubr.msk.f32.vlgmr.msra.gmra.mrb[6].mxu0 %vm229_vm6, %v887_v17 }
 0x88d   :  { %4570 = vmatprep.mubr.msk.f32.mxu0 %vm229_vm6, %v5304_v43  ;;  %4569 = vmatpush3.msra.mxu0 %v71_v27 }
 0x88e   :  { %4583 = vmatprep.subr.mxu0 %v5068_v53 }
 0x894   :  { %4571 = vmatmul.mubr.msk.f32.vlgmr.msra.gmra.mrb[6].mxu0 %vm229_vm6, %v5293_v34 }
 0x895   :  { %4585 = vmatprep.mubr.msk.f32.mxu0 %vm5069_vm5, %v5068_v53 }
 0x8e9   :  { %v1225_v46 = vpop.xlane.xlu1 %1224 }
 0x8ea   :  { %4916 = vrcp.f32 %v1225_v46 }
 0x8ed   :  { %v1228_v62 = vpop.xlane.xlu1 %1227 }
 0x8ee   :  { %4918 = vrcp.f32 %v1228_v62 }
 0x8f1   :  { %v1234_v48 = vpop.permute.xlu1 %1233 }
 0x8f2   :  { %4584 = vmatpush3.msra.mxu0 %v1234_v48 }
 0x8f3   :  { %4593 = vmatprep.subr.mxu0 %v73_v47 }
 0x8f4   :  { %v4917_v43 = vpop.eup %4916 }
 0x8f5   :  { %v1230_v50 = vmul.f32 %v4917_v43, %v4913_v37  ;;  %v1547_v2 = vpop.permute.xlu1 %1546 }
 0x8f7   :  { %4586 = vmatmul.mubr.msk.f32.vlgmr.msra.gmra.mrb[8].mxu0 %vm229_vm6, %v1230_v50 }
 0x8f8   :  { %v4919_v34 = vpop.eup %4918  ;;  %4594 = vmatpush3.msra.mxu0 %v73_v47 }
 0x8f9   :  { %v1232_v52 = vmul.f32 %v4919_v34, %v4915_v40  ;;  %4603 = vmatprep.subr.mxu0 %v5068_v53 }
 0x8fb   :  { %4591 = vmatmul.mubr.msk.f32.vlgmr.msra.gmra.mrb[16].mxu1 %vm229_vm6, %v1232_v52 }
 0x8fc   :  { %4599 = vmatpush3.xpose.msk.msra.mxu1 %vm229_vm6, %v1471_v49  ;;  %4600 = vmatprep.mubr.msk.f32.mxu1 %vm5069_vm5, %v5068_v53 }
 0x8fd   :  { %4608 = vmatprep.subr.mxu1 %v5068_v53 }
 0x8ff   :  { %4601 = vmatmul.mubr.msk.f32.vlgmr.msra.gmra.mrb[18].mxu1 %vm229_vm6, %v1469_v54  ;;  %v1945_v54 = vld [vmem:[%s5830_s5] sm:$0xff] }
 0x900   :  { %4610 = vmatprep.mubr.msk.f32.mxu1 %vm5069_vm5, %v5068_v53 }
 0x9ca   :  { %v1305_v55 = vpop.f32.mrb[8].mxu0 }
 0x9cb   :  { %v4587_v57 = vpop.f32.mrb[9].mxu0  ;;  %4595 = vmatprep.mubr.msk.f32.mxu0 %vm229_vm6, %v1305_v55  ;;  %v1946_v55 = vld [vmem:[%s5830_s5 + $0x8] sm:$0xff] }
 0x9cc   :  { %v1947_v57 = vld [vmem:[%s5830_s5 + $0x10] sm:$0xff] }
 0x9ce   :  { %v1381_v59 = vpop.f32.mrb[16].mxu1 }
 0x9cf   :  { %v4592_v61 = vpop.f32.mrb[17].mxu1  ;;  %4596 = vmatmul.mubr.msk.f32.vlgmr.msra.gmra.mrb[6].mxu0 %vm229_vm6, %v1381_v59  ;;  %v4802_v59 = vpack.c.bf16 %v1946_v55, %v1945_v54  ;;  %v2049_v55 = vsub.s32 5, %v5191_v30 }
 0x9d0   :  { %4604 = vmatpush3.xpose.msk.msra.mxu0 %vm229_vm6, %v1549_v51  ;;  %4605 = vmatprep.mubr.msk.f32.mxu0 %vm5069_vm5, %v5068_v53  ;;  %v1948_v61 = vld [vmem:[%s5830_s5 + $0x18] sm:$0xff] }
 0x9d1   :  { %4613 = vmatprep.subr.mxu0 %v5068_v53 }
 0x9d2   :  { %v1542_v3 = vpop.f32.mrb[18].mxu1 }
 0x9d3   :  { %v1624_v4 = vsel %vm68_vm8, -1e+09, %v1542_v3  ;;  %v4602_v5 = vpop.f32.mrb[19].mxu1  ;;  %4606 = vmatmul.mubr.msk.f32.vlgmr.msra.gmra.mrb[10].mxu0 %vm229_vm6, %v1547_v2  ;;  %v4806_v2 = vpack.c.bf16 %v1948_v61, %v1947_v57  ;;  %v2039_v3 = vld [vmem:[%s5832_s7] sm:$0xff]  ;;  %v2050_v57 = vrot.slane %v5199_v38, %v2049_v55 }
 0x9d4   :  { %v1626_v6 = vsel %vm229_vm6, %v1624_v4, -inf  ;;  %4615 = vmatprep.mubr.msk.f32.mxu0 %vm5069_vm5, %v5068_v53  ;;  %v2041_v5 = vld [vmem:[%s5832_s7 + $0x10] sm:$0xff] }
 0x9d5   :  { %1627 = vmax.xlane.f32.xlu0 %v1626_v6 }
 0xa62   :  { %v1628_v7 = vpop.xlane.xlu0 %1627 }
 0xa63   :  { %v1632_v9 = vsub.f32 %v1624_v4, %v1628_v7  ;;  %v2040_v4 = vld [vmem:[%s5832_s7 + $0x8] sm:$0xff]  ;;  %v2042_v7 = vld [vmem:[%s5832_s7 + $0x18] sm:$0xff] }
 0xa64   :  { %v4810_v6 = vpack.c.bf16 %v2040_v4, %v2039_v3 }
 0xa65   :  { %v1634_v10 = vmul.f32 1.442695, %v1632_v9  ;;  %v4814_v9 = vpack.c.bf16 %v2042_v7, %v2041_v5 }
 0xa67   :  { %4920 = vpow2.f32 %v1634_v10  ;;  %v2043_v10 = vld [vmem:[%s5832_s7 + $0x20] sm:$0xff] }
 0xa71   :  { %v4921_v11 = vpop.eup %4920 }
 0xa72   :  { %v1638_v12 = vsel %vm229_vm6, %v4921_v11, 0.0 }
 0xa73   :  { %1639 = vadd.xlane.f32.xlu0 %v1638_v12 }
 0xaa6   :  { %v1620_v13 = vpop.f32.mrb[10].mxu0 }
 0xaa7   :  { %v1625_v14 = vsel %vm69_vm7, -1e+09, %v1620_v13  ;;  %v4607_v15 = vpop.f32.mrb[11].mxu0 }
 0xaa8   :  { %v1629_v16 = vsel %vm229_vm6, %v1625_v14, -inf }
 0xaa9   :  { %1630 = vmax.xlane.f32.xlu1 %v1629_v16 }
 0xaba   :  { %1724 = vrot.lane.b32.xlu1 %v5221_v56, %s5080_s27 }
 0xb00   :  { %v1640_v22 = vpop.xlane.xlu0 %1639 }
 0xb36   :  { %v1631_v17 = vpop.xlane.xlu1 %1630 }
 0xb37   :  { %v1633_v18 = vsub.f32 %v1625_v14, %v1631_v17 }
 0xb39   :  { %v1636_v19 = vmul.f32 1.442695, %v1633_v18 }
 0xb3a   :  { %v1725_v20 = vpop.permute.xlu1 %1724 }
 0xb3b   :  { %4922 = vpow2.f32 %v1636_v19  ;;  %4614 = vmatpush3.msra.mxu0 %v1725_v20 }
 0xb3c   :  { %4924 = vrcp.f32 %v1640_v22  ;;  %4618 = vmatprep.subr.mxu0 %v74_v28 }
 0xb45   :  { %v4923_v21 = vpop.eup %4922 }
 0xb46   :  { %v1641_v60 = vsel %vm229_vm6, %v4923_v21, 0.0  ;;  %v4925_v24 = vpop.eup %4924 }
 0xb47   :  { %1642 = vadd.xlane.f32.xlu0 %v1641_v60  ;;  %v1645_v25 = vmul.f32 %v4925_v24, %v4921_v11  ;;  %v2044_v11 = vld [vmem:[%s5832_s7 + $0x28] sm:$0xff] }
 0xb48   :  { %v4818_v12 = vpack.c.bf16 %v2044_v11, %v2043_v10 }
 0xb5d   :  { %1648 = vrot.lane.b32.xlu0 %v5223_v58, %s5080_s27 }
 0xbd4   :  { %v1643_v23 = vpop.xlane.xlu0 %1642 }
 0xbd5   :  { %4926 = vrcp.f32 %v1643_v23 }
 0xbd8   :  { %v1649_v56 = vpop.permute.xlu0 %1648 }
 0xbd9   :  { %4609 = vmatpush3.msra.mxu1 %v1649_v56 }
 0xbda   :  { %4611 = vmatmul.mubr.msk.f32.vlgmr.msra.gmra.mrb[20].mxu1 %vm229_vm6, %v1645_v25  ;;  %4803 = vmatprep.subr.bf16.mxu1 %v4802_v59 }
 0xbdb   :  { %4805 = vmatpush3.bf16.msra.mxu1 %v4802_v59 }
 0xbdc   :  { %4807 = vmatprep.subr.bf16.mxu1 %v4806_v2 }
 0xbdf   :  { %v4927_v26 = vpop.eup %4926  ;;  %4809 = vmatpush3.bf16.msra.mxu1 %v4806_v2 }
 0xbe0   :  { %v1647_v27 = vmul.f32 %v4927_v26, %v4923_v21 }
 0xbe2   :  { %4616 = vmatmul.mubr.msk.f32.vlgmr.msra.gmra.mrb[12].mxu0 %vm229_vm6, %v1647_v27  ;;  %v1929_v27 = vsub.s32 2, %v5191_v30 }
 0xbe3   :  { %4619 = vmatpush3.msra.mxu0 %v74_v28 }
 0xbe4   :  { %4811 = vmatprep.subr.bf16.mxu0 %v4810_v6  ;;  %v1930_v28 = vrot.slane %v5199_v38, %v1929_v27 }
 0xcad   :  { %v1720_v58 = vpop.f32.mrb[20].mxu1 }
 0xcae   :  { %v4612_v29 = vpop.f32.mrb[21].mxu1  ;;  %4620 = vmatprep.mubr.msk.f32.mxu0 %vm229_vm6, %v1720_v58 }
 0xcb5   :  { %v1796_v31 = vpop.f32.mrb[12].mxu0 }
 0xcb6   :  { %v4617_v32 = vpop.f32.mrb[13].mxu0  ;;  %4621 = vmatmul.mubr.msk.f32.vlgmr.msra.gmra.mrb[6].mxu0 %vm229_vm6, %v1796_v31  ;;  %v1941_v31 = vsub.s32 3, %v5191_v30 }
 0xcb7   :  { %4813 = vmatpush3.bf16.msra.mxu0 %v4810_v6 }
 0xcb8   :  { %4815 = vmatprep.subr.bf16.mxu0 %v4814_v9 }
 0xcbb   :  { %4817 = vmatpush3.bf16.msra.mxu0 %v4814_v9 }
 0xcbc   :  { %4819 = vmatprep.subr.bf16.mxu0 %v4818_v12 }
 0xcbf   :  { %4821 = vmatpush3.bf16.msra.mxu0 %v4818_v12 }
 0xd89   :  { %v4622_v37 = vpop.f32.mrb[6].mxu0 }
 0xd8a   :  { %v1884_v39 = vadd.f32 %v4622_v37, %v5169_v1  ;;  %v1872_v40 = vpop.f32.mrb[7].mxu0 }
 0xd8b   :  { %v1883_v41 = vadd.f32 %v1872_v40, %v5167_v0 }
 0xd8c   :  { %v5413_v44 = vadd.f32 %v1888_v35, %v1884_v39  ;;  %v1942_v39 = vrot.slane %v5199_v38, %v1941_v31 }
 0xd8d   :  { %v5415_v45 = vadd.f32 %v1888_v35, %v1883_v41 }
 0xd8e   :  { %v1894_v46 = vsel %vm75_vm0, %v5413_v44, 0.0 }
 0xd8f   :  { %1895 = vadd.xlane.f32.xlu0 %v1894_v46  ;;  %v1891_v62 = vsel %vm75_vm0, %v5415_v45, 0.0 }
 0xd90   :  { %1892 = vadd.xlane.f32.xlu1 %v1891_v62 }
 0xe1c   :  { %v5421_v47 = vpop.xlane.xlu0 %1895 }
 0xe1d   :  { %v1898_v48 = vmul.f32 0.03125, %v5421_v47  ;;  %v5424_v1 = vpop.xlane.xlu1 %1892  ;;  %v1926_v58 = vsub.f32 %v5413_v44, %v5421_v47  ;;  %v2045_v47 = vld [vmem:[%s5832_s7 + $0x30] sm:$0xff] }
 0xe1e   :  { %v1897_v0 = vmul.f32 0.03125, %v5424_v1  ;;  %v1925_v29 = vsub.f32 %v5415_v45, %v5424_v1  ;;  %v2046_v1 = vld [vmem:[%s5832_s7 + $0x38] sm:$0xff] }
 0xe1f   :  { %v1900_v49 = vsub.f32 %v5413_v44, %v1898_v48  ;;  %v1932_v32 = vmul.f32 %v1930_v28, %v1926_v58 }
 0xe20   :  { %v1899_v43 = vsub.f32 %v5415_v45, %v1897_v0  ;;  %v1931_v37 = vmul.f32 %v1930_v28, %v1925_v29  ;;  %v4822_v0 = vpack.c.bf16 %v2046_v1, %v2045_v47 }
 0xe21   :  { %v1902_v50 = vmul.f32 %v1900_v49, %v1900_v49  ;;  %v4312_v49 = vld [vmem:[%s5831_s6] ss:$0 sm:$0xff] }
 0xe22   :  { %v1901_v34 = vmul.f32 %v1899_v43, %v1899_v43  ;;  %4823 = vmatprep.subr.bf16.mxu0 %v4822_v0 }
 0xe23   :  { %v1906_v51 = vsel %vm75_vm0, %v1902_v50, 0.0  ;;  %4825 = vmatpush3.bf16.msra.mxu0 %v4822_v0 }
 0xe24   :  { %1907 = vadd.xlane.f32.xlu1 %v1906_v51  ;;  %v1903_v52 = vsel %vm75_vm0, %v1901_v34, 0.0  ;;  %4674 = vmatprep.subr.mxu0 %v5068_v53 }
 0xe25   :  { %1904 = vadd.xlane.f32.xlu0 %v1903_v52 }
 0xeb1   :  { %v1908_v13 = vpop.xlane.xlu1 %1907 }
 0xeb2   :  { %v1910_v14 = vmul.f32 0.032258064, %v1908_v13  ;;  %v1905_v15 = vpop.xlane.xlu0 %1904 }
 0xeb3   :  { %v1909_v16 = vmul.f32 0.032258064, %v1905_v15 }
 0xeb4   :  { %4928 = vrsqrt.f32 %v1910_v14  ;;  %vm1920_vm9 = vcmp.eq.f32.partialorder %v1910_v14, inf  ;;  %v1923_v20 = vand.u32 2147483648, %v1910_v14  ;;  %vm1922_vm10 = vcmp.eq.f32.partialorder %v1910_v14, 0.0 }
 0xeb5   :  { %4930 = vrsqrt.f32 %v1909_v16  ;;  %vm1913_vm11 = vcmp.eq.f32.partialorder %v1909_v16, inf  ;;  %v1916_v22 = vand.u32 2147483648, %v1909_v16  ;;  %vm1915_vm12 = vcmp.eq.f32.partialorder %v1909_v16, 0.0 }
 0xebe   :  { %v4929_v17 = vpop.eup %4928 }
 0xebf   :  { %v4931_v18 = vpop.eup %4930  ;;  %v1919_v19 = vmul.f32 %v4929_v17, %v1910_v14  ;;  %v4323_v17 = vld [vmem:[%s5827_s2 + $0x28] sm:$0xff] }
 0xec0   :  { %v1912_v21 = vmul.f32 %v4931_v18, %v1909_v16  ;;  %v4324_v18 = vld [vmem:[%s5827_s2 + $0x30] sm:$0xff] }
 0xec1   :  { %v1921_v60 = vsel %vm1920_vm9, %v1910_v14, %v1919_v19 }
 0xec2   :  { %v1924_v23 = vsel %vm1922_vm10, %v1923_v20, %v1921_v60  ;;  %v1914_v24 = vsel %vm1913_vm11, %v1909_v16, %v1912_v21  ;;  %v4322_v16 = vld [vmem:[%s5827_s2 + $0x20] sm:$0xff]  ;;  %v4325_v20 = vld [vmem:[%s5827_s2 + $0x38] sm:$0xff] }
 0xec3   :  { %v1934_v25 = vadd.f32 1e-06, %v1924_v23  ;;  %v1917_v56 = vsel %vm1915_vm12, %v1916_v22, %v1914_v24  ;;  %v4826_v19 = vpack.c.bf16 %v4323_v17, %v4322_v16  ;;  %v4830_v21 = vpack.c.bf16 %v4325_v20, %v4324_v18 }
 0xec4   :  { %v1933_v26 = vadd.f32 1e-06, %v1917_v56 }
 0xec5   :  { %4932 = vrcp.f32 %v1934_v25  ;;  %4827 = vmatprep.subr.bf16.mxu1 %v4826_v19 }
 0xec6   :  { %4934 = vrcp.f32 %v1933_v26 }
 0xecf   :  { %v4933_v35 = vpop.eup %4932 }
 0xed0   :  { %v4935_v40 = vpop.eup %4934  ;;  %v1938_v41 = vmul.f32 %v4933_v35, %v1932_v32 }
 0xed1   :  { %v1936_v46 = vmul.f32 %v4935_v40, %v1931_v37 }
 0xed2   :  { %v1944_v48 = vadd.f32 %v1942_v39, %v1938_v41 }
 0xed3   :  { %v1943_v62 = vadd.f32 %v1942_v39, %v1936_v46  ;;  %v5523_v46 = vld [vmem:[%s5833_s8 + $0x8] sm:$0xff] }
 0xed5   :  { %4631 = vmatprep.mubr.msk.f32.mxu1 %vm75_vm0, %v1943_v62  ;;  %v2181_v62 = vrot.slane %v5523_v46, %v5194_v36 }
 0xed6   :  { %4632 = vmatmul.mubr.msk.f32.vlgmr.msra.gmra.mrb[22].mxu1 %vm75_vm0, %v1944_v48 }
 0xed7   :  { %4829 = vmatpush3.bf16.msra.mxu1 %v4826_v19 }
 0xed8   :  { %4831 = vmatprep.subr.bf16.mxu1 %v4830_v21 }
 0xedb   :  { %4833 = vmatpush3.bf16.msra.mxu1 %v4830_v21 }
 0xedc   :  { %4664 = vmatprep.subr.mxu1 %v5068_v53 }
 0xfa9   :  { %v4633_v43 = vpop.f32.mrb[22].mxu1 }
 0xfaa   :  { %v2034_v50 = vadd.f32 %v4633_v43, %v4312_v49  ;;  %v2028_v34 = vpop.f32.mrb[23].mxu1  ;;  %v2193_v43 = vrot.slane %v5523_v46, %v5205_v42 }
 0xfab   :  { %v2029_v51 = vadd.f32 %v4312_v49, %v2028_v34 }
 0xfac   :  { %v2038_v54 = vmax.f32 %v2034_v50, 0.0 }
 0xfad   :  { %v2037_v52 = vmax.f32 %v2029_v51, 0.0 }
 0xfaf   :  { %4650 = vmatprep.mubr.msk.f32.mxu0 %vm2051_vm13, %v2037_v52 }
 0xfb0   :  { %4651 = vmatmul.mubr.msk.f32.vlgmr.msra.gmra.mrb[14].mxu0 %vm2051_vm13, %v2038_v54 }
 0xfb1   :  { %4676 = vmatprep.mubr.msk.f32.mxu0 %vm5069_vm5, %v5068_v53 }
0x1083   :  { %v4652_v59 = vpop.f32.mrb[14].mxu0 }
0x1084   :  { %v2130_v61 = vadd.f32 %v4652_v59, %v2050_v57  ;;  %v2124_v2 = vpop.f32.mrb[15].mxu0 }
0x1085   :  { %v2125_v3 = vadd.f32 %v2124_v2, %v2050_v57  ;;  %v4327_v57 = vld [vmem:[%s5828_s3 + $0x1] ss:$0 sm:$0xff] }
0x1086   :  { %v5494_v4 = vadd.f32 %v2130_v61, %v5413_v44 }
0x1087   :  { %v5497_v5 = vadd.f32 %v2125_v3, %v5415_v45 }
0x1088   :  { %v2145_v6 = vsel %vm75_vm0, %v5494_v4, 0.0 }
0x1089   :  { %2146 = vadd.xlane.f32.xlu1 %v2145_v6  ;;  %v2142_v7 = vsel %vm75_vm0, %v5497_v5, 0.0 }
0x108a   :  { %2143 = vadd.xlane.f32.xlu0 %v2142_v7 }
0x1116   :  { %v2147_v9 = vpop.xlane.xlu1 %2146 }
0x1117   :  { %v2149_v38 = vmul.f32 0.03125, %v2147_v9  ;;  %v2144_v10 = vpop.xlane.xlu0 %2143  ;;  %v2177_v48 = vsub.f32 %v5494_v4, %v2147_v9 }
0x1118   :  { %v2148_v11 = vmul.f32 0.03125, %v2144_v10  ;;  %v2176_v47 = vsub.f32 %v5497_v5, %v2144_v10 }
0x1119   :  { %v2151_v12 = vsub.f32 %v5494_v4, %v2149_v38  ;;  %v2183_v1 = vmul.f32 %v2181_v62, %v2177_v48 }
0x111a   :  { %v2150_v44 = vsub.f32 %v5497_v5, %v2148_v11  ;;  %v2182_v49 = vmul.f32 %v2181_v62, %v2176_v47 }
0x111b   :  { %v2153_v13 = vmul.f32 %v2151_v12, %v2151_v12 }
0x111c   :  { %v2152_v14 = vmul.f32 %v2150_v44, %v2150_v44 }
0x111d   :  { %v2157_v45 = vsel %vm75_vm0, %v2153_v13, 0.0 }
0x111e   :  { %2158 = vadd.xlane.f32.xlu1 %v2157_v45  ;;  %v2154_v15 = vsel %vm75_vm0, %v2152_v14, 0.0 }
0x111f   :  { %2155 = vadd.xlane.f32.xlu0 %v2154_v15 }
0x11ab   :  { %v2159_v60 = vpop.xlane.xlu1 %2158 }
0x11ac   :  { %v2161_v22 = vmul.f32 0.032258064, %v2159_v60  ;;  %v2156_v23 = vpop.xlane.xlu0 %2155 }
0x11ad   :  { %v2160_v24 = vmul.f32 0.032258064, %v2156_v23 }
0x11ae   :  { %4936 = vrsqrt.f32 %v2161_v22  ;;  %vm2171_vm14 = vcmp.eq.f32.partialorder %v2161_v22, inf  ;;  %v2174_v28 = vand.u32 2147483648, %v2161_v22  ;;  %vm2173_vm15 = vcmp.eq.f32.partialorder %v2161_v22, 0.0 }
0x11af   :  { %4938 = vrsqrt.f32 %v2160_v24  ;;  %vm2164_vm1 = vcmp.eq.f32.partialorder %v2160_v24, inf  ;;  %v2167_v32 = vand.u32 2147483648, %v2160_v24  ;;  %vm2166_vm2 = vcmp.eq.f32.partialorder %v2160_v24, 0.0 }
0x11b8   :  { %v4937_v25 = vpop.eup %4936 }
0x11b9   :  { %v4939_v56 = vpop.eup %4938  ;;  %v2170_v26 = vmul.f32 %v4937_v25, %v2161_v22 }
0x11ba   :  { %v2163_v58 = vmul.f32 %v4939_v56, %v2160_v24 }
0x11bb   :  { %v2172_v29 = vsel %vm2171_vm14, %v2161_v22, %v2170_v26 }
0x11bc   :  { %v2175_v35 = vsel %vm2173_vm15, %v2174_v28, %v2172_v29  ;;  %v2165_v37 = vsel %vm2164_vm1, %v2160_v24, %v2163_v58 }
0x11bd   :  { %v2185_v39 = vadd.f32 1e-06, %v2175_v35  ;;  %v2168_v40 = vsel %vm2166_vm2, %v2167_v32, %v2165_v37 }
0x11be   :  { %v2184_v41 = vadd.f32 1e-06, %v2168_v40 }
0x11bf   :  { %4940 = vrcp.f32 %v2185_v39 }
0x11c0   :  { %4942 = vrcp.f32 %v2184_v41 }
0x11c9   :  { %v4941_v0 = vpop.eup %4940 }
0x11ca   :  { %v4943_v50 = vpop.eup %4942  ;;  %v2189_v34 = vmul.f32 %v4941_v0, %v2183_v1 }
0x11cb   :  { %v2187_v51 = vmul.f32 %v4943_v50, %v2182_v49 }
0x11cc   :  { %v2195_v54 = vadd.f32 %v2193_v43, %v2189_v34 }
0x11cd   :  { %v2194_v52 = vadd.f32 %v2193_v43, %v2187_v51 }
0x11cf   :  { %4661 = vmatprep.mubr.msk.f32.mxu1 %vm75_vm0, %v2194_v52 }
0x11d0   :  { %4662 = vmatmul.mubr.msk.f32.vlgmr.msra.gmra.mrb[24].mxu1 %vm75_vm0, %v2195_v54 }
0x11d1   :  { %4666 = vmatprep.mubr.msk.f32.mxu1 %vm5069_vm5, %v5068_v53 }
0x12a3   :  { %v4663_v59 = vpop.f32.mrb[24].mxu1 }
0x12a4   :  { %v5538_v61 = vadd.f32 %v4663_v59, %v4327_v57  ;;  %v2281_v2 = vpop.f32.mrb[25].mxu1 }
0x12a5   :  { %v5540_v3 = vadd.f32 %v4327_v57, %v2281_v2 }
0x12a6   :  { %2371 = vrot.lane.b32.xlu1 %v5538_v61, %s5070_s11  ;;  %v5557_v38 = vmul.f32 0.35355338, %v5538_v61 }
0x12a7   :  { %2293 = vrot.lane.b32.xlu0 %v5540_v3, %s5070_s11  ;;  %v5548_v7 = vmul.f32 0.35355338, %v5540_v3 }
0x1318   :  { %v2372_v9 = vpop.permute.xlu1 %2371 }
0x1319   :  { %v2294_v6 = vpop.permute.xlu0 %2293 }
0x131a   :  { %4665 = vmatpush3.xpose.msk.msra.mxu1 %vm229_vm6, %v2294_v6 }
0x131b   :  { %4669 = vmatprep.subr.mxu1 %v5068_v53 }
0x131d   :  { %4667 = vmatmul.mubr.msk.f32.vlgmr.msra.gmra.mrb[26].mxu1 %vm229_vm6, %v5548_v7 }
0x131e   :  { %4670 = vmatpush3.xpose.msk.msra.mxu1 %vm229_vm6, %v2372_v9  ;;  %4671 = vmatprep.mubr.msk.f32.mxu1 %vm5069_vm5, %v5068_v53 }
0x131f   :  { %4679 = vmatprep.subr.mxu1 %v5068_v53 }
0x1321   :  { %4672 = vmatmul.mubr.msk.f32.vlgmr.msra.gmra.mrb[28].mxu1 %vm229_vm6, %v5557_v38 }
0x1322   :  { %4681 = vmatprep.mubr.msk.f32.mxu1 %vm5069_vm5, %v5068_v53 }
0x13f0   :  { %v2366_v10 = vpop.f32.mrb[26].mxu1 }
0x13f1   :  { %v4668_v11 = vpop.f32.mrb[27].mxu1  ;;  %v2448_v45 = vsel %vm68_vm8, -1e+09, %v2366_v10 }
0x13f2   :  { %v2450_v15 = vsel %vm229_vm6, %v2448_v45, -inf }
0x13f4   :  { %v2444_v12 = vpop.f32.mrb[28].mxu1 }
0x13f5   :  { %v2449_v44 = vsel %vm69_vm7, -1e+09, %v2444_v12  ;;  %v4673_v13 = vpop.f32.mrb[29].mxu1 }
0x13f6   :  { %v2453_v14 = vsel %vm229_vm6, %v2449_v44, -inf }
0x13f7   :  { %2454 = vmax.xlane.f32.xlu1 %v2453_v14 }
0x1408   :  { %2704 = vrot.lane.b32.xlu1 %v5538_v61, %s5071_s12 }
0x140c   :  { %2702 = vrot.lane.b32.xlu1 %v5557_v38, %s5072_s13 }
0x1430   :  { %2451 = vmax.xlane.f32.xlu1 %v2450_v15 }
0x1441   :  { %2626 = vrot.lane.b32.xlu1 %v5540_v3, %s5071_s12 }
0x1445   :  { %2624 = vrot.lane.b32.xlu1 %v5548_v7, %s5072_s13 }
0x1449   :  { %3120 = vrot.lane.b32.xlu1 %v5540_v3, %s5073_s15 }
0x1484   :  { %v2455_v16 = vpop.xlane.xlu1 %2454 }
0x1485   :  { %v2457_v17 = vsub.f32 %v2449_v44, %v2455_v16 }
0x1487   :  { %v2460_v18 = vmul.f32 1.442695, %v2457_v17 }
0x1488   :  { %v2705_v21 = vpop.permute.xlu1 %2704 }
0x1489   :  { %4944 = vpow2.f32 %v2460_v18 }
0x148c   :  { %v2703_v60 = vpop.permute.xlu1 %2702 }
0x1493   :  { %v4945_v19 = vpop.eup %4944 }
0x1494   :  { %v2465_v20 = vsel %vm229_vm6, %v4945_v19, 0.0 }
0x1495   :  { %2466 = vadd.xlane.f32.xlu0 %v2465_v20 }
0x14ab   :  { %2548 = vrot.lane.b32.xlu0 %v5538_v61, %s5074_s16 }
0x14bd   :  { %v2452_v22 = vpop.xlane.xlu1 %2451 }
0x14be   :  { %v2456_v23 = vsub.f32 %v2448_v45, %v2452_v22 }
0x14c0   :  { %v2458_v24 = vmul.f32 1.442695, %v2456_v23 }
0x14c1   :  { %v2627_v39 = vpop.permute.xlu1 %2626 }
0x14c2   :  { %4946 = vpow2.f32 %v2458_v24 }
0x14c5   :  { %v2625_v41 = vpop.permute.xlu1 %2624 }
0x14c9   :  { %v3121_v11 = vpop.permute.xlu1 %3120 }
0x14cc   :  { %v4947_v25 = vpop.eup %4946 }
0x14cd   :  { %v2462_v56 = vsel %vm229_vm6, %v4947_v25, 0.0 }
0x14ce   :  { %2463 = vadd.xlane.f32.xlu0 %v2462_v56 }
0x14e4   :  { %2472 = vrot.lane.b32.xlu0 %v5540_v3, %s5074_s16 }
0x1522   :  { %v2467_v26 = vpop.xlane.xlu0 %2466 }
0x1523   :  { %4948 = vrcp.f32 %v2467_v26 }
0x1526   :  { %v2549_v28 = vpop.permute.xlu0 %2548 }
0x1527   :  { %4680 = vmatpush3.msra.mxu1 %v2549_v28 }
0x1528   :  { %4689 = vmatprep.subr.mxu1 %v5068_v53 }
0x152d   :  { %v4949_v58 = vpop.eup %4948 }
0x152e   :  { %v2471_v29 = vmul.f32 %v4949_v58, %v4945_v19 }
0x1530   :  { %4682 = vmatmul.mubr.msk.f32.vlgmr.msra.gmra.mrb[30].mxu1 %vm229_vm6, %v2471_v29 }
0x1531   :  { %4690 = vmatpush3.xpose.msk.msra.mxu1 %vm229_vm6, %v2705_v21  ;;  %4691 = vmatprep.mubr.msk.f32.mxu1 %vm5069_vm5, %v5068_v53 }
0x1532   :  { %4699 = vmatprep.subr.mxu1 %v5068_v53 }
0x1534   :  { %4692 = vmatmul.mubr.msk.f32.vlgmr.msra.gmra.mrb[32].mxu1 %vm229_vm6, %v2703_v60 }
0x1535   :  { %4701 = vmatprep.mubr.msk.f32.mxu1 %vm5069_vm5, %v5068_v53 }
0x155b   :  { %v2464_v32 = vpop.xlane.xlu0 %2463 }
0x155c   :  { %4950 = vrcp.f32 %v2464_v32 }
0x155f   :  { %v2473_v35 = vpop.permute.xlu0 %2472 }
0x1560   :  { %4675 = vmatpush3.msra.mxu0 %v2473_v35 }
0x1561   :  { %4684 = vmatprep.subr.mxu0 %v5068_v53 }
0x1566   :  { %v4951_v37 = vpop.eup %4950 }
0x1567   :  { %v2469_v40 = vmul.f32 %v4951_v37, %v4947_v25 }
0x1569   :  { %4677 = vmatmul.mubr.msk.f32.vlgmr.msra.gmra.mrb[16].mxu0 %vm229_vm6, %v2469_v40  ;;  %v4318_v40 = vld [vmem:[%s5829_s4 + $0x20] sm:$0xff] }
0x156a   :  { %4685 = vmatpush3.xpose.msk.msra.mxu0 %vm229_vm6, %v2627_v39  ;;  %4686 = vmatprep.mubr.msk.f32.mxu0 %vm5069_vm5, %v5068_v53  ;;  %v4319_v39 = vld [vmem:[%s5829_s4 + $0x28] sm:$0xff] }
0x156b   :  { %4694 = vmatprep.subr.mxu0 %v5068_v53 }
0x156d   :  { %4687 = vmatmul.mubr.msk.f32.vlgmr.msra.gmra.mrb[18].mxu0 %vm229_vm6, %v2625_v41 }
0x156e   :  { %4696 = vmatprep.mubr.msk.f32.mxu0 %vm5069_vm5, %v5068_v53 }
0x1603   :  { %v5604_v62 = vpop.f32.mrb[30].mxu1 }
0x1604   :  { %v4683_v48 = vpop.f32.mrb[31].mxu1 }
0x1607   :  { %v2776_v47 = vpop.f32.mrb[32].mxu1 }
0x1608   :  { %v2781_v1 = vsel %vm69_vm7, -1e+09, %v2776_v47  ;;  %v4693_v0 = vpop.f32.mrb[33].mxu1 }
0x1609   :  { %v2785_v49 = vsel %vm229_vm6, %v2781_v1, -inf }
0x160a   :  { %2786 = vmax.xlane.f32.xlu0 %v2785_v49 }
0x1620   :  { %2880 = vrot.lane.b32.xlu0 %v5538_v61, %s5075_s17 }
0x1624   :  { %3118 = vrot.lane.b32.xlu0 %v5548_v7, %s5076_s0 }
0x1628   :  { %3196 = vrot.lane.b32.xlu0 %v5557_v38, %s5076_s0 }
0x163c   :  { %v5615_v43 = vpop.f32.mrb[16].mxu0 }
0x163d   :  { %v4678_v50 = vpop.f32.mrb[17].mxu0 }
0x1640   :  { %v2698_v34 = vpop.f32.mrb[18].mxu0 }
0x1641   :  { %v4688_v51 = vpop.f32.mrb[19].mxu0  ;;  %v2780_v9 = vsel %vm68_vm8, -1e+09, %v2698_v34 }
0x1642   :  { %v2782_v10 = vsel %vm229_vm6, %v2780_v9, -inf }
0x1697   :  { %v2787_v52 = vpop.xlane.xlu0 %2786 }
0x1698   :  { %v2789_v54 = vsub.f32 %v2781_v1, %v2787_v52 }
0x169a   :  { %v2792_v57 = vmul.f32 1.442695, %v2789_v54 }
0x169b   :  { %v2881_v59 = vpop.permute.xlu0 %2880 }
0x169c   :  { %4952 = vpow2.f32 %v2792_v57  ;;  %4700 = vmatpush3.msra.mxu1 %v2881_v59 }
0x169d   :  { %4714 = vmatprep.subr.mxu1 %v5068_v53 }
0x169f   :  { %v3119_v14 = vpop.permute.xlu0 %3118 }
0x16a3   :  { %v3197_v15 = vpop.permute.xlu0 %3196 }
0x16a6   :  { %v4953_v2 = vpop.eup %4952 }
0x16a7   :  { %v2797_v6 = vsel %vm229_vm6, %v4953_v2, 0.0 }
0x16a8   :  { %2798 = vadd.xlane.f32.xlu1 %v2797_v6 }
0x16b9   :  { %3198 = vrot.lane.b32.xlu1 %v5538_v61, %s5073_s15 }
0x16dd   :  { %2783 = vmax.xlane.f32.xlu1 %v2782_v10 }
0x1735   :  { %v2799_v12 = vpop.xlane.xlu1 %2798 }
0x1736   :  { %4954 = vrcp.f32 %v2799_v12 }
0x1739   :  { %v3199_v45 = vpop.permute.xlu1 %3198 }
0x1740   :  { %v4955_v44 = vpop.eup %4954 }
0x1741   :  { %v2803_v13 = vmul.f32 %v4955_v44, %v4953_v2  ;;  %v4320_v2 = vld [vmem:[%s5829_s4 + $0x30] sm:$0xff] }
0x1743   :  { %4702 = vmatmul.mubr.msk.f32.vlgmr.msra.gmra.mrb[34].mxu1 %vm229_vm6, %v2803_v13 }
0x1744   :  { %4715 = vmatpush3.xpose.msk.msra.mxu1 %vm229_vm6, %v3121_v11  ;;  %4716 = vmatprep.mubr.msk.f32.mxu1 %vm5069_vm5, %v5068_v53 }
0x1745   :  { %4719 = vmatprep.subr.mxu1 %v5068_v53 }
0x1747   :  { %4717 = vmatmul.mubr.msk.f32.vlgmr.msra.gmra.mrb[36].mxu1 %vm229_vm6, %v3119_v14 }
0x1748   :  { %4720 = vmatpush3.xpose.msk.msra.mxu1 %vm229_vm6, %v3199_v45  ;;  %4721 = vmatprep.mubr.msk.f32.mxu1 %vm5069_vm5, %v5068_v53 }
0x1749   :  { %4729 = vmatprep.subr.mxu1 %v5068_v53 }
0x174b   :  { %4722 = vmatmul.mubr.msk.f32.vlgmr.msra.gmra.mrb[38].mxu1 %vm229_vm6, %v3197_v15 }
0x174c   :  { %4731 = vmatprep.mubr.msk.f32.mxu1 %vm5069_vm5, %v5068_v53 }
0x176a   :  { %v2784_v16 = vpop.xlane.xlu1 %2783 }
0x176b   :  { %v2788_v17 = vsub.f32 %v2780_v9, %v2784_v16 }
0x176d   :  { %v2790_v18 = vmul.f32 1.442695, %v2788_v17 }
0x176f   :  { %4956 = vpow2.f32 %v2790_v18 }
0x1779   :  { %v4957_v19 = vpop.eup %4956 }
0x177a   :  { %v2794_v20 = vsel %vm229_vm6, %v4957_v19, 0.0 }
0x177b   :  { %2795 = vadd.xlane.f32.xlu0 %v2794_v20 }
0x1791   :  { %2804 = vrot.lane.b32.xlu0 %v5540_v3, %s5075_s17 }
0x1795   :  { %3374 = vrot.lane.b32.xlu0 %v5538_v61, %s5077_s14 }
0x1799   :  { %3535 = vrot.lane.b32.xlu0 %v5540_v3, %s5078_s1 }
0x179d   :  { %3613 = vrot.lane.b32.xlu0 %v5538_v61, %s5078_s1 }
0x17a1   :  { %3533 = vrot.lane.b32.xlu0 %v5548_v7, %s5079_s18 }
0x1808   :  { %v2796_v21 = vpop.xlane.xlu0 %2795 }
0x1809   :  { %4958 = vrcp.f32 %v2796_v21 }
0x180c   :  { %v2805_v60 = vpop.permute.xlu0 %2804 }
0x180d   :  { %4695 = vmatpush3.msra.mxu0 %v2805_v60 }
0x180e   :  { %4704 = vmatprep.subr.mxu0 %v4319_v39 }
0x1810   :  { %v3375_v22 = vpop.permute.xlu0 %3374 }
0x1811   :  { %4730 = vmatpush3.msra.mxu1 %v3375_v22 }
0x1812   :  { %4739 = vmatprep.subr.mxu1 %v5068_v53 }
0x1813   :  { %v4959_v23 = vpop.eup %4958 }
0x1814   :  { %v2801_v24 = vmul.f32 %v4959_v23, %v4957_v19  ;;  %v3536_v9 = vpop.permute.xlu0 %3535 }
0x1816   :  { %4697 = vmatmul.mubr.msk.f32.vlgmr.msra.gmra.mrb[20].mxu0 %vm229_vm6, %v2801_v24  ;;  %v2952_v25 = vpop.f32.mrb[34].mxu1 }
0x1817   :  { %v4703_v56 = vpop.f32.mrb[35].mxu1  ;;  %4705 = vmatpush3.msra.mxu0 %v4319_v39 }
0x1818   :  { %4709 = vmatprep.subr.mxu0 %v4318_v40  ;;  %v3614_v11 = vpop.permute.xlu0 %3613 }
0x181a   :  { %v3192_v26 = vpop.f32.mrb[36].mxu1 }
0x181b   :  { %v3274_v28 = vsel %vm68_vm8, -1e+09, %v3192_v26  ;;  %v4718_v58 = vpop.f32.mrb[37].mxu1 }
0x181c   :  { %v3276_v7 = vsel %vm229_vm6, %v3274_v28, -inf  ;;  %v3534_v44 = vpop.permute.xlu0 %3533 }
0x181d   :  { %3277 = vmax.xlane.f32.xlu1 %v3276_v7 }
0x181e   :  { %v3270_v29 = vpop.f32.mrb[38].mxu1 }
0x181f   :  { %v3275_v32 = vsel %vm69_vm7, -1e+09, %v3270_v29  ;;  %v4723_v35 = vpop.f32.mrb[39].mxu1 }
0x1820   :  { %v3279_v37 = vsel %vm229_vm6, %v3275_v32, -inf }
0x1821   :  { %3280 = vmax.xlane.f32.xlu1 %v3279_v37 }
0x18aa   :  { %v3278_v41 = vpop.xlane.xlu1 %3277 }
0x18ab   :  { %v3282_v48 = vsub.f32 %v3274_v28, %v3278_v41 }
0x18ad   :  { %v3284_v47 = vmul.f32 1.442695, %v3282_v48  ;;  %v4321_v48 = vld [vmem:[%s5829_s4 + $0x38] sm:$0xff]  ;;  %s5081_s4 = smov [#allocation7]  }
0x18ae   :  { %v3281_v1 = vpop.xlane.xlu1 %3280 }
0x18af   :  { %4960 = vpow2.f32 %v3284_v47  ;;  %v3283_v0 = vsub.f32 %v3275_v32, %v3281_v1 }
0x18b1   :  { %v3286_v49 = vmul.f32 1.442695, %v3283_v0 }
0x18b3   :  { %4962 = vpow2.f32 %v3286_v49  ;;  %v3953_v49 = vrot.slane %v5523_v46, %v1887_v33 }
0x18b9   :  { %v4961_v50 = vpop.eup %4960 }
0x18ba   :  { %v3288_v34 = vsel %vm229_vm6, %v4961_v50, 0.0 }
0x18bb   :  { %3289 = vadd.xlane.f32.xlu1 %v3288_v34 }
0x18bd   :  { %v4963_v51 = vpop.eup %4962 }
0x18be   :  { %v3291_v52 = vsel %vm229_vm6, %v4963_v51, 0.0 }
0x18bf   :  { %3292 = vadd.xlane.f32.xlu1 %v3291_v52 }
0x18d0   :  { %3298 = vrot.lane.b32.xlu1 %v5540_v3, %s5077_s14  ;;  %s4264_s14 = sshll.u32 %s5081_s4, 4  ;;  %s4265_s14 = int_to_ptr.vmem [resolvable:$true] %s4264_s14 }
0x18d1   :  { %p5041_p3 = scmp.lt.s32.totalorder %s4265_s14, %s4265_s14 }
0x18d4   :  { %3611 = vrot.lane.b32.xlu1 %v5557_v38, %s5079_s18 }
0x18e9   :  { %v2876_v54 = vpop.f32.mrb[20].mxu0 }
0x18ea   :  { %v4698_v57 = vpop.f32.mrb[21].mxu0  ;;  %4706 = vmatprep.mubr.msk.f32.mxu0 %vm229_vm6, %v2876_v54 }
0x18eb   :  { %4707 = vmatmul.mubr.msk.f32.vlgmr.msra.gmra.mrb[22].mxu0 %vm229_vm6, %v2952_v25 }
0x18ec   :  { %4711 = vmatprep.mubr.msk.f32.mxu0 %vm229_vm6, %v5615_v43  ;;  %4710 = vmatpush3.msra.mxu0 %v4318_v40 }
0x18ed   :  { %4724 = vmatprep.subr.mxu0 %v5068_v53 }
0x18f3   :  { %4712 = vmatmul.mubr.msk.f32.vlgmr.msra.gmra.mrb[22].mxu0 %vm229_vm6, %v5604_v62 }
0x18f4   :  { %4726 = vmatprep.mubr.msk.f32.mxu0 %vm5069_vm5, %v5068_v53 }
0x1948   :  { %v3290_v59 = vpop.xlane.xlu1 %3289 }
0x1949   :  { %4964 = vrcp.f32 %v3290_v59 }
0x194c   :  { %v3293_v38 = vpop.xlane.xlu1 %3292 }
0x194d   :  { %4966 = vrcp.f32 %v3293_v38 }
0x1950   :  { %v3299_v6 = vpop.permute.xlu1 %3298 }
0x1951   :  { %4725 = vmatpush3.msra.mxu0 %v3299_v6 }
0x1952   :  { %4734 = vmatprep.subr.mxu0 %v4320_v2 }
0x1953   :  { %v4965_v43 = vpop.eup %4964 }
0x1954   :  { %v3295_v10 = vmul.f32 %v4965_v43, %v4961_v50  ;;  %v3612_v16 = vpop.permute.xlu1 %3611 }
0x1956   :  { %4727 = vmatmul.mubr.msk.f32.vlgmr.msra.gmra.mrb[24].mxu0 %vm229_vm6, %v3295_v10 }
0x1957   :  { %v4967_v62 = vpop.eup %4966  ;;  %4735 = vmatpush3.msra.mxu0 %v4320_v2 }
0x1958   :  { %v3297_v12 = vmul.f32 %v4967_v62, %v4963_v51  ;;  %4744 = vmatprep.subr.mxu0 %v5068_v53 }
0x195a   :  { %4732 = vmatmul.mubr.msk.f32.vlgmr.msra.gmra.mrb[40].mxu1 %vm229_vm6, %v3297_v12  ;;  %v4362_v12 = vld [vmem:[%s5830_s5 + $0x20] sm:$0xff] }
0x195b   :  { %4740 = vmatpush3.xpose.msk.msra.mxu1 %vm229_vm6, %v3536_v9  ;;  %4741 = vmatprep.mubr.msk.f32.mxu1 %vm5069_vm5, %v5068_v53 }
0x195c   :  { %4749 = vmatprep.subr.mxu1 %v5068_v53 }
0x195e   :  { %4742 = vmatmul.mubr.msk.f32.vlgmr.msra.gmra.mrb[42].mxu1 %vm229_vm6, %v3534_v44  ;;  %v4363_v44 = vld [vmem:[%s5830_s5 + $0x28] sm:$0xff] }
0x195f   :  { %4751 = vmatprep.mubr.msk.f32.mxu1 %vm5069_vm5, %v5068_v53 }
0x1a29   :  { %v3370_v13 = vpop.f32.mrb[24].mxu0 }
0x1a2a   :  { %v4728_v14 = vpop.f32.mrb[25].mxu0  ;;  %4736 = vmatprep.mubr.msk.f32.mxu0 %vm229_vm6, %v3370_v13  ;;  %v4364_v13 = vld [vmem:[%s5830_s5 + $0x30] sm:$0xff] }
0x1a2b   :  { %v4834_v14 = vpack.c.bf16 %v4363_v44, %v4362_v12 }
0x1a2d   :  { %v3446_v45 = vpop.f32.mrb[40].mxu1 }
0x1a2e   :  { %v4733_v15 = vpop.f32.mrb[41].mxu1  ;;  %4737 = vmatmul.mubr.msk.f32.vlgmr.msra.gmra.mrb[22].mxu0 %vm229_vm6, %v3446_v45  ;;  %v4365_v45 = vld [vmem:[%s5830_s5 + $0x38] sm:$0xff] }
0x1a2f   :  { %4745 = vmatpush3.xpose.msk.msra.mxu0 %vm229_vm6, %v3614_v11  ;;  %4746 = vmatprep.mubr.msk.f32.mxu0 %vm5069_vm5, %v5068_v53  ;;  %v4838_v15 = vpack.c.bf16 %v4365_v45, %v4364_v13 }
0x1a30   :  { %4754 = vmatprep.subr.mxu0 %v5068_v53 }
0x1a31   :  { %v3607_v17 = vpop.f32.mrb[42].mxu1 }
0x1a32   :  { %v3689_v18 = vsel %vm68_vm8, -1e+09, %v3607_v17  ;;  %v4743_v19 = vpop.f32.mrb[43].mxu1  ;;  %4747 = vmatmul.mubr.msk.f32.vlgmr.msra.gmra.mrb[26].mxu0 %vm229_vm6, %v3612_v16  ;;  %v4370_v16 = vld [vmem:[%s5832_s7 + $0x40] sm:$0xff]  ;;  %v4371_v17 = vld [vmem:[%s5832_s7 + $0x48] sm:$0xff] }
0x1a33   :  { %v3691_v20 = vsel %vm229_vm6, %v3689_v18, -inf  ;;  %4756 = vmatprep.mubr.msk.f32.mxu0 %vm5069_vm5, %v5068_v53  ;;  %v4842_v19 = vpack.c.bf16 %v4371_v17, %v4370_v16 }
0x1a34   :  { %3692 = vmax.xlane.f32.xlu0 %v3691_v20  ;;  %v4373_v20 = vld [vmem:[%s5832_s7 + $0x58] sm:$0xff] }
0x1ac1   :  { %v3693_v21 = vpop.xlane.xlu0 %3692 }
0x1ac2   :  { %v3697_v60 = vsub.f32 %v3689_v18, %v3693_v21  ;;  %v4372_v18 = vld [vmem:[%s5832_s7 + $0x50] sm:$0xff] }
0x1ac3   :  { %v4846_v21 = vpack.c.bf16 %v4373_v20, %v4372_v18 }
0x1ac4   :  { %v3699_v22 = vmul.f32 1.442695, %v3697_v60  ;;  %v4374_v60 = vld [vmem:[%s5832_s7 + $0x60] sm:$0xff] }
0x1ac6   :  { %4968 = vpow2.f32 %v3699_v22  ;;  %v4375_v22 = vld [vmem:[%s5832_s7 + $0x68] sm:$0xff] }
0x1ad0   :  { %v4969_v23 = vpop.eup %4968 }
0x1ad1   :  { %v3703_v24 = vsel %vm229_vm6, %v4969_v23, 0.0 }
0x1ad2   :  { %3704 = vadd.xlane.f32.xlu0 %v3703_v24 }
0x1b05   :  { %v3685_v25 = vpop.f32.mrb[26].mxu0 }
0x1b06   :  { %v3690_v8 = vsel %vm69_vm7, -1e+09, %v3685_v25  ;;  %v4748_v56 = vpop.f32.mrb[27].mxu0 }
0x1b07   :  { %v3694_v26 = vsel %vm229_vm6, %v3690_v8, -inf }
0x1b08   :  { %3695 = vmax.xlane.f32.xlu1 %v3694_v26 }
0x1b19   :  { %3789 = vrot.lane.b32.xlu1 %v5538_v61, %s5080_s27 }
0x1b5f   :  { %v3705_v63 = vpop.xlane.xlu0 %3704 }
0x1b95   :  { %v3696_v53 = vpop.xlane.xlu1 %3695 }
0x1b96   :  { %v3698_v28 = vsub.f32 %v3690_v8, %v3696_v53 }
0x1b98   :  { %v3701_v58 = vmul.f32 1.442695, %v3698_v28 }
0x1b99   :  { %v3790_v7 = vpop.permute.xlu1 %3789 }
0x1b9a   :  { %4970 = vpow2.f32 %v3701_v58  ;;  %4755 = vmatpush3.msra.mxu0 %v3790_v7 }
0x1b9b   :  { %4972 = vrcp.f32 %v3705_v63  ;;  %4759 = vmatprep.subr.mxu0 %v4321_v48 }
0x1ba4   :  { %v4971_v29 = vpop.eup %4970 }
0x1ba5   :  { %v3706_v32 = vsel %vm229_vm6, %v4971_v29, 0.0  ;;  %v4973_v37 = vpop.eup %4972 }
0x1ba6   :  { %3707 = vadd.xlane.f32.xlu0 %v3706_v32  ;;  %v3710_v39 = vmul.f32 %v4973_v37, %v4969_v23  ;;  %v4850_v23 = vpack.c.bf16 %v4375_v22, %v4374_v60 }
0x1bbc   :  { %3713 = vrot.lane.b32.xlu0 %v5540_v3, %s5080_s27 }
0x1c33   :  { %v3708_v35 = vpop.xlane.xlu0 %3707 }
0x1c34   :  { %4974 = vrcp.f32 %v3708_v35 }
0x1c37   :  { %v3714_v61 = vpop.permute.xlu0 %3713 }
0x1c38   :  { %4750 = vmatpush3.msra.mxu1 %v3714_v61 }
0x1c39   :  { %4752 = vmatmul.mubr.msk.f32.vlgmr.msra.gmra.mrb[44].mxu1 %vm229_vm6, %v3710_v39  ;;  %4835 = vmatprep.subr.bf16.mxu1 %v4834_v14 }
0x1c3a   :  { %4837 = vmatpush3.bf16.msra.mxu1 %v4834_v14 }
0x1c3b   :  { %4839 = vmatprep.subr.bf16.mxu1 %v4838_v15 }
0x1c3e   :  { %v4975_v40 = vpop.eup %4974  ;;  %4841 = vmatpush3.bf16.msra.mxu1 %v4838_v15 }
0x1c3f   :  { %v3712_v41 = vmul.f32 %v4975_v40, %v4971_v29  ;;  %v3995_v40 = vrot.slane %v5523_v46, %v1929_v27  ;;  %v4376_v27 = vld [vmem:[%s5832_s7 + $0x70] sm:$0xff] }
0x1c41   :  { %4757 = vmatmul.mubr.msk.f32.vlgmr.msra.gmra.mrb[28].mxu0 %vm229_vm6, %v3712_v41 }
0x1c42   :  { %4760 = vmatpush3.msra.mxu0 %v4321_v48 }
0x1c43   :  { %4843 = vmatprep.subr.bf16.mxu0 %v4842_v19 }
0x1d0c   :  { %v3785_v3 = vpop.f32.mrb[44].mxu1 }
0x1d0d   :  { %v4753_v47 = vpop.f32.mrb[45].mxu1  ;;  %4761 = vmatprep.mubr.msk.f32.mxu0 %vm229_vm6, %v3785_v3 }
0x1d14   :  { %v3861_v1 = vpop.f32.mrb[28].mxu0 }
0x1d15   :  { %v4758_v0 = vpop.f32.mrb[29].mxu0  ;;  %4762 = vmatmul.mubr.msk.f32.vlgmr.msra.gmra.mrb[22].mxu0 %vm229_vm6, %v3861_v1 }
0x1d16   :  { %4845 = vmatpush3.bf16.msra.mxu0 %v4842_v19  ;;  %v4007_v0 = vrot.slane %v5523_v46, %v1941_v31  ;;  %v4367_v31 = vld [vmem:[%s5831_s6 + $0x1] ss:$0 sm:$0xff] }
0x1d17   :  { %4847 = vmatprep.subr.bf16.mxu0 %v4846_v21 }
0x1d1a   :  { %4849 = vmatpush3.bf16.msra.mxu0 %v4846_v21 }
0x1d1b   :  { %4851 = vmatprep.subr.bf16.mxu0 %v4850_v23 }
0x1d1e   :  { %4853 = vmatpush3.bf16.msra.mxu0 %v4850_v23 }
0x1de8   :  { %v4763_v50 = vpop.f32.mrb[22].mxu0 }
0x1de9   :  { %v3949_v34 = vadd.f32 %v4763_v50, %v5494_v4  ;;  %v3937_v51 = vpop.f32.mrb[23].mxu0 }
0x1dea   :  { %v3948_v52 = vadd.f32 %v3937_v51, %v5497_v5 }
0x1deb   :  { %v5723_v54 = vadd.f32 %v3953_v49, %v3949_v34 }
0x1dec   :  { %v5725_v57 = vadd.f32 %v3953_v49, %v3948_v52 }
0x1ded   :  { %v3959_v59 = vsel %vm75_vm0, %v5723_v54, 0.0 }
0x1dee   :  { %3960 = vadd.xlane.f32.xlu0 %v3959_v59  ;;  %v3956_v38 = vsel %vm75_vm0, %v5725_v57, 0.0  ;;  %v4377_v59 = vld [vmem:[%s5832_s7 + $0x78] sm:$0xff] }
0x1def   :  { %3957 = vadd.xlane.f32.xlu1 %v3956_v38  ;;  %v4854_v38 = vpack.c.bf16 %v4377_v59, %v4376_v27 }
0x1df1   :  { %4855 = vmatprep.subr.bf16.mxu0 %v4854_v38 }
0x1df2   :  { %4857 = vmatpush3.bf16.msra.mxu0 %v4854_v38 }
0x1e7b   :  { %v5731_v2 = vpop.xlane.xlu0 %3960 }
0x1e7c   :  { %v3963_v33 = vmul.f32 0.03125, %v5731_v2  ;;  %v5734_v4 = vpop.xlane.xlu1 %3957  ;;  %v3991_v41 = vsub.f32 %v5723_v54, %v5731_v2 }
0x1e7d   :  { %v3962_v5 = vmul.f32 0.03125, %v5734_v4  ;;  %v3990_v48 = vsub.f32 %v5725_v57, %v5734_v4 }
0x1e7e   :  { %v3965_v6 = vsub.f32 %v5723_v54, %v3963_v33  ;;  %v3997_v3 = vmul.f32 %v3995_v40, %v3991_v41 }
0x1e7f   :  { %v3964_v9 = vsub.f32 %v5725_v57, %v3962_v5  ;;  %v3996_v1 = vmul.f32 %v3995_v40, %v3990_v48 }
0x1e80   :  { %v3967_v43 = vmul.f32 %v3965_v6, %v3965_v6 }
0x1e81   :  { %v3966_v10 = vmul.f32 %v3964_v9, %v3964_v9 }
0x1e82   :  { %v3971_v62 = vsel %vm75_vm0, %v3967_v43, 0.0  ;;  %v4118_v43 = vrot.slane %v5523_v46, %v2049_v55 }
0x1e83   :  { %3972 = vadd.xlane.f32.xlu1 %v3971_v62  ;;  %v3968_v11 = vsel %vm75_vm0, %v3966_v10, 0.0 }
0x1e84   :  { %3969 = vadd.xlane.f32.xlu0 %v3968_v11 }
0x1f10   :  { %v3973_v24 = vpop.xlane.xlu1 %3972 }
0x1f11   :  { %v3975_v25 = vmul.f32 0.032258064, %v3973_v24  ;;  %v3970_v8 = vpop.xlane.xlu0 %3969 }
0x1f12   :  { %v3974_v56 = vmul.f32 0.032258064, %v3970_v8 }
0x1f13   :  { %4976 = vrsqrt.f32 %v3975_v25  ;;  %vm3985_vm3 = vcmp.eq.f32.partialorder %v3975_v25, inf  ;;  %v3988_v58 = vand.u32 2147483648, %v3975_v25  ;;  %vm3987_vm4 = vcmp.eq.f32.partialorder %v3975_v25, 0.0 }
0x1f14   :  { %4978 = vrsqrt.f32 %v3974_v56  ;;  %vm3978_vm5 = vcmp.eq.f32.partialorder %v3974_v56, inf  ;;  %v3981_v32 = vand.u32 2147483648, %v3974_v56  ;;  %vm3980_vm6 = vcmp.eq.f32.partialorder %v3974_v56, 0.0 }
0x1f1d   :  { %v4977_v26 = vpop.eup %4976 }
0x1f1e   :  { %v4979_v53 = vpop.eup %4978  ;;  %v3984_v28 = vmul.f32 %v4977_v26, %v3975_v25 }
0x1f1f   :  { %v3977_v7 = vmul.f32 %v4979_v53, %v3974_v56 }
0x1f20   :  { %v3986_v29 = vsel %vm3985_vm3, %v3975_v25, %v3984_v28 }
0x1f21   :  { %v3989_v63 = vsel %vm3987_vm4, %v3988_v58, %v3986_v29  ;;  %v3979_v35 = vsel %vm3978_vm5, %v3974_v56, %v3977_v7 }
0x1f22   :  { %v3999_v37 = vadd.f32 1e-06, %v3989_v63  ;;  %v3982_v39 = vsel %vm3980_vm6, %v3981_v32, %v3979_v35  ;;  %v4202_v63 = vld [vmem:[%s5834_s9] sm:$0x3]  ;;  %s5036_s9 = scalar_lea.vmem %s4265_s14, 256 }
0x1f23   :  { %v3998_v61 = vadd.f32 1e-06, %v3982_v39  ;;  %v4242_v35 = vrot.slane %v4202_v63, %v5194_v36  ;;  %p5037_p2 = scmp.ne.s32.totalorder %s4265_s14, %s5036_s9  ;;  %p5042_p4 = scmp.lt.s32.totalorder %s5036_s9, %s5036_s9 }
0x1f24   :  { %4980 = vrcp.f32 %v3999_v37 }
0x1f25   :  { %4982 = vrcp.f32 %v3998_v61  ;;  %v4254_v61 = vrot.slane %v4202_v63, %v5205_v42  ;;  %p5043_p5 = por %p5042_p4, %p5041_p3 }
0x1f27   :  { %p5044_p6 = pnand %p5043_p5, %p5037_p2 }
0x1f2e   :  { %v4981_v47 = vpop.eup %4980 }
0x1f2f   :  { %v4983_v49 = vpop.eup %4982  ;;  %v4003_v50 = vmul.f32 %v4981_v47, %v3997_v3 }
0x1f30   :  { %v4001_v34 = vmul.f32 %v4983_v49, %v3996_v1 }
0x1f31   :  { %v4009_v52 = vadd.f32 %v4007_v0, %v4003_v50 }
0x1f32   :  { %v4008_v51 = vadd.f32 %v4007_v0, %v4001_v34 }
0x1f34   :  { %4772 = vmatprep.mubr.msk.f32.mxu1 %vm75_vm0, %v4008_v51 }
0x1f35   :  { %4773 = vmatmul.mubr.msk.f32.vlgmr.msra.gmra.mrb[46].mxu1 %vm75_vm0, %v4009_v52 }
0x2008   :  { %v4774_v2 = vpop.f32.mrb[46].mxu1 }
0x2009   :  { %v4101_v33 = vadd.f32 %v4774_v2, %v4367_v31  ;;  %v4095_v4 = vpop.f32.mrb[47].mxu1 }
0x200a   :  { %v4096_v5 = vadd.f32 %v4367_v31, %v4095_v4 }
0x200b   :  { %v4105_v9 = vmax.f32 %v4101_v33, 0.0 }
0x200c   :  { %v4104_v6 = vmax.f32 %v4096_v5, 0.0 }
0x200e   :  { %4791 = vmatprep.mubr.msk.f32.mxu0 %vm2051_vm13, %v4104_v6 }
0x200f   :  { %4792 = vmatmul.mubr.msk.f32.vlgmr.msra.gmra.mrb[30].mxu0 %vm2051_vm13, %v4105_v9 }
0x20e2   :  { %v4793_v10 = vpop.f32.mrb[30].mxu0 }
0x20e3   :  { %v4197_v62 = vadd.f32 %v4793_v10, %v4118_v43  ;;  %v4191_v11 = vpop.f32.mrb[31].mxu0 }
0x20e4   :  { %v4192_v12 = vadd.f32 %v4191_v11, %v4118_v43 }
0x20e5   :  { %v4201_v44 = vadd.f32 %v4197_v62, %v5723_v54 }
0x20e6   :  { %v4200_v13 = vadd.f32 %v4192_v12, %v5725_v57 }
0x20e7   :  { %v4206_v14 = vsel %vm75_vm0, %v4201_v44, 0.0 }
0x20e8   :  { %4207 = vadd.xlane.f32.xlu1 %v4206_v14  ;;  %v4203_v45 = vsel %vm75_vm0, %v4200_v13, 0.0 }
0x20e9   :  { %4204 = vadd.xlane.f32.xlu0 %v4203_v45 }
0x2175   :  { %v4208_v15 = vpop.xlane.xlu1 %4207 }
0x2176   :  { %v4210_v16 = vmul.f32 0.03125, %v4208_v15  ;;  %v4205_v17 = vpop.xlane.xlu0 %4204  ;;  %v4238_v37 = vsub.f32 %v4201_v44, %v4208_v15 }
0x2177   :  { %v4209_v30 = vmul.f32 0.03125, %v4205_v17  ;;  %v4237_v39 = vsub.f32 %v4200_v13, %v4205_v17 }
0x2178   :  { %v4212_v18 = vsub.f32 %v4201_v44, %v4210_v16  ;;  %v4244_v40 = vmul.f32 %v4242_v35, %v4238_v37 }
0x2179   :  { %v4211_v55 = vsub.f32 %v4200_v13, %v4209_v30  ;;  %v4243_v48 = vmul.f32 %v4242_v35, %v4237_v39 }
0x217a   :  { %v4214_v46 = vmul.f32 %v4212_v18, %v4212_v18 }
0x217b   :  { %v4213_v19 = vmul.f32 %v4211_v55, %v4211_v55 }
0x217c   :  { %v4218_v20 = vsel %vm75_vm0, %v4214_v46, 0.0 }
0x217d   :  { %4219 = vadd.xlane.f32.xlu1 %v4218_v20  ;;  %v4215_v54 = vsel %vm75_vm0, %v4213_v19, 0.0 }
0x217e   :  { %4216 = vadd.xlane.f32.xlu0 %v4215_v54 }
0x220a   :  { %v4220_v57 = vpop.xlane.xlu1 %4219 }
0x220b   :  { %v4222_v21 = vmul.f32 0.032258064, %v4220_v57  ;;  %v4217_v60 = vpop.xlane.xlu0 %4216 }
0x220c   :  { %v4221_v22 = vmul.f32 0.032258064, %v4217_v60 }
0x220d   :  { %4984 = vrsqrt.f32 %v4222_v21  ;;  %vm4232_vm7 = vcmp.eq.f32.partialorder %v4222_v21, inf  ;;  %v4235_v8 = vand.u32 2147483648, %v4222_v21  ;;  %vm4234_vm8 = vcmp.eq.f32.partialorder %v4222_v21, 0.0 }
0x220e   :  { %4986 = vrsqrt.f32 %v4221_v22  ;;  %vm4225_vm9 = vcmp.eq.f32.partialorder %v4221_v22, inf  ;;  %v4228_v53 = vand.u32 2147483648, %v4221_v22  ;;  %vm4227_vm10 = vcmp.eq.f32.partialorder %v4221_v22, 0.0 }
0x2217   :  { %v4985_v23 = vpop.eup %4984 }
0x2218   :  { %v4987_v24 = vpop.eup %4986  ;;  %v4231_v25 = vmul.f32 %v4985_v23, %v4222_v21 }
0x2219   :  { %v4224_v56 = vmul.f32 %v4987_v24, %v4221_v22 }
0x221a   :  { %v4233_v26 = vsel %vm4232_vm7, %v4222_v21, %v4231_v25 }
0x221b   :  { %v4236_v28 = vsel %vm4234_vm8, %v4235_v8, %v4233_v26  ;;  %v4226_v58 = vsel %vm4225_vm9, %v4221_v22, %v4224_v56 }
0x221c   :  { %v4246_v7 = vadd.f32 1e-06, %v4236_v28  ;;  %v4229_v29 = vsel %vm4227_vm10, %v4228_v53, %v4226_v58 }
0x221d   :  { %v4245_v32 = vadd.f32 1e-06, %v4229_v29 }
0x221e   :  { %4988 = vrcp.f32 %v4246_v7 }
0x221f   :  { %4990 = vrcp.f32 %v4245_v32 }
0x2228   :  { %v4989_v41 = vpop.eup %4988 }
0x2229   :  { %v4991_v3 = vpop.eup %4990  ;;  %v4250_v47 = vmul.f32 %v4989_v41, %v4244_v40 }
0x222a   :  { %v4248_v1 = vmul.f32 %v4991_v3, %v4243_v48 }
0x222b   :  { %v4256_v0 = vadd.f32 %v4254_v61, %v4250_v47 }
0x222c   :  { %v4255_v49 = vadd.f32 %v4254_v61, %v4248_v1 }
0x222d   :  { %4258 = vst.msk [vmem:[#allocation7 + $0x8] sm:$0xff] %vm75_vm0, %v4256_v0 }
0x222e   :  { %4257 = vst.msk [vmem:[#allocation7] sm:$0xff] %vm75_vm0, %v4255_v49 }
0x222f   :  { %5047 = shalt.err (!%p5044_p6)
}
0x2230   :  { %s5048_s27 = scalar_lea.hbm %s5835_s10, 256 }
0x2231   :  { %p5049_p7 = scmp.ne.s32.totalorder %s5835_s10, %s5048_s27  ;;  %p5052_p8 = scmp.lt.u32.totalorder %s5048_s27, %s5835_s10 }
0x2233   :  { %p5054_p9 = pnand %p5052_p8, %p5049_p7 }
0x2235   :  { %5057 = shalt.err (!%p5054_p9)
}
0x2236   :  { %s5837_s23 = smov 128  }
0x2237   :  { %4270 = dma.vmem_to_hbm [thread:$0]  %s4265_s14, 256, %s5835_s10, [#allocation4], %s5837_s23, %s5837_s23, %s5066_s24  }
0x2238   :  { %5062 = dma.done.wait [#allocation4], 256  }
0x2239   :  { %5063 = vsyncadd [#allocation4], 4294967040 }
0x223a   :  { %4274 = vsyncpa [#allocation3], 1 }
0x223b   :  { %4275 = vsyncpa [#allocation6], 1 }
0x223c   :  { %4276 = vsyncpa [#allocation4], 1 }

</bundles_post_ra>
